<compile_context>
chip_gen: v5e
topology: v5e:2x2
jax: 0.10.0
libtpu: 0.0.40
codegen_flags: <defaults>
</compile_context>

<pallas_src>
import functools
import math

import jax
import jax.numpy as jnp
from jax import lax
from jax.experimental import pallas as pl
from jax.experimental.pallas import tpu as pltpu


def _mha_kernel(*refs, n_heads, key_dim, value_dim, norm_factor, mxu_dtype,
                self_attn, nq_tile):
    """One (batch, query-tile) grid step."""
    if self_attn:
        x_ref, wq_ref, wk_ref, wv_ref, wo_ref, o_ref = refs
    else:
        q_ref, x_ref, wq_ref, wk_ref, wv_ref, wo_ref, o_ref = refs

    if mxu_dtype is None:
        mx = lambda v: v
    else:
        mx = lambda v: v.astype(mxu_dtype)

    x = mx(x_ref[0])                         # (T, D) key/value activations
    if self_attn:
        # Query tile is a slice of the same activation block: slice in-kernel
        # instead of DMA'ing the identical (T, D) block a second time.
        if nq_tile == x.shape[0]:
            q = x
        else:
            start = pl.multiple_of(pl.program_id(1) * nq_tile, nq_tile)
            q = lax.dynamic_slice_in_dim(x, start, nq_tile, axis=0)
    else:
        q = mx(q_ref[0])                     # (nq_tile, D)

    # Fused-head projections: lane-wide MXU matmuls; column block
    # [i*dk:(i+1)*dk] is head i.  Accumulate in f32 regardless of operand dtype.
    qp = jnp.dot(q, mx(wq_ref[...]), preferred_element_type=jnp.float32)   # (nq, H*dk)
    kp = jnp.dot(x, mx(wk_ref[...]), preferred_element_type=jnp.float32)   # (T,  H*dk)
    vp = jnp.dot(x, mx(wv_ref[...]), preferred_element_type=jnp.float32)   # (T,  H*dv)
    # Fold the 1/sqrt(dk) scale into qp once (nq*D mults) instead of scaling
    # every per-head (nq, T) scores tensor.
    qp = qp * norm_factor

    # Per-head attention.  dk/dv are inherently tiny (D/H); the loop is a static
    # unroll so the LLO scheduler interleaves heads.  Head outputs stay in vregs
    # and are concatenated once — no lane-sparse VMEM scratch round trip.
    head_outs = []
    for i in range(n_heads):
        q_h = qp[:, i * key_dim:(i + 1) * key_dim]        # (nq, dk)
        k_h = kp[:, i * key_dim:(i + 1) * key_dim]        # (T,  dk)
        v_h = vp[:, i * value_dim:(i + 1) * value_dim]    # (T,  dv)

        # Contract dk directly (no K.T materialization).  Narrow-cast the
        # operands so the bf16 path covers the attention matmuls too.
        scores = lax.dot_general(
            mx(q_h), mx(k_h), (((1,), (1,)), ((), ())),
            preferred_element_type=jnp.float32)           # (nq, T)

        m = jnp.max(scores, axis=-1, keepdims=True)
        e = jnp.exp(scores - m)
        denom = jnp.sum(e, axis=-1, keepdims=True)
        # EUP-seeded reciprocal + one Newton step => ~f32 accuracy, no divide.
        r = pl.reciprocal(denom, approx=True)
        r = r * (2.0 - denom * r)

        # Deferred normalization: attn@V with unnormalized exponentials, then
        # scale the (nq, dv) result — ~T/dv fewer VPU multiplies than scaling
        # the (nq, T) attention tensor, and one fewer (nq, T) live temporary.
        o_h = jnp.dot(mx(e), mx(v_h), preferred_element_type=jnp.float32)  # (nq, dv)
        head_outs.append(o_h * r)

    heads = jnp.concatenate(head_outs, axis=-1)           # (nq, H*dv)

    # Wide head->embedding projection against the concatenated (H*dv, D) w_out,
    # stored straight into the output block.
    o_ref[0] = jnp.dot(mx(heads), mx(wo_ref[...]),
                       preferred_element_type=jnp.float32).astype(o_ref.dtype)


def _pick_nq_tile(nq):
    # Second "parallel" grid axis over query tiles: keeps both v7x TensorCores
    # busy even at B == 1 and bounds the per-step (nq, T) intermediates.
    for t in (256, 128):
        if nq > t and nq % t == 0:
            return t
    return nq


def multi_head_attention(q, h, w_query, w_key, w_value, w_out, *, mxu_dtype=None):
    """q: (B, Nq, D); h: (B, T, D) or None (self-attention).  Returns (B, Nq, D).

    Weights keep the PyTorch module layout:
      w_query/w_key: (H, D, dk), w_value: (H, D, dv), w_out: (H, dv, D).
    mxu_dtype=jnp.bfloat16 narrows MXU operands (projections AND attention
    matmuls) on v5e/v6e/v7x; accumulation and softmax stay f32.
    """
    if h is None:
        h = q
    self_attn = h is q

    B, Nq, D = q.shape
    _, T, _ = h.shape
    H, _, dk = w_query.shape
    dv = w_value.shape[-1]
    norm_factor = 1.0 / math.sqrt(dk)
    out_dtype = q.dtype

    nq_tile = _pick_nq_tile(Nq)
    n_nq = Nq // nq_tile

    # Fuse the head axis of the weights so the kernel runs lane-wide matmuls:
    #   (H, D, dk) -> (D, H*dk)   and   (H, dv, D) -> (H*dv, D).
    # Column/row block i*dk:(i+1)*dk belongs to head i, matching the module's
    # heads.permute(1, 2, 0, 3).reshape(-1, H*dv) @ w_out.view(-1, D).
    wq_cat = jnp.transpose(w_query, (1, 0, 2)).reshape(D, H * dk)
    wk_cat = jnp.transpose(w_key, (1, 0, 2)).reshape(D, H * dk)
    wv_cat = jnp.transpose(w_value, (1, 0, 2)).reshape(D, H * dv)
    wo_cat = w_out.reshape(H * dv, D)

    if mxu_dtype is not None:
        # Narrow activations + weights at the boundary: halves per-step q/h DMA
        # and removes repeated in-kernel weight casts.
        q = q.astype(mxu_dtype)
        h = q if self_attn else h.astype(mxu_dtype)
        wq_cat = wq_cat.astype(mxu_dtype)
        wk_cat = wk_cat.astype(mxu_dtype)
        wv_cat = wv_cat.astype(mxu_dtype)
        wo_cat = wo_cat.astype(mxu_dtype)

    kernel = functools.partial(
        _mha_kernel, n_heads=H, key_dim=dk, value_dim=dv,
        norm_factor=norm_factor, mxu_dtype=mxu_dtype,
        self_attn=self_attn, nq_tile=nq_tile)

    w_specs = [
        pl.BlockSpec((D, H * dk), lambda b, t: (0, 0)),    # w_query (fused heads)
        pl.BlockSpec((D, H * dk), lambda b, t: (0, 0)),    # w_key   (fused heads)
        pl.BlockSpec((D, H * dv), lambda b, t: (0, 0)),    # w_value (fused heads)
        pl.BlockSpec((H * dv, D), lambda b, t: (0, 0)),    # w_out   (fused heads)
    ]
    if self_attn:
        # Single activation input, reused for Q and K/V inside the kernel.
        in_specs = [pl.BlockSpec((1, T, D), lambda b, t: (b, 0, 0))] + w_specs
        args = (h, wq_cat, wk_cat, wv_cat, wo_cat)
    else:
        in_specs = ([pl.BlockSpec((1, nq_tile, D), lambda b, t: (b, t, 0)),
                     pl.BlockSpec((1, T, D), lambda b, t: (b, 0, 0))] + w_specs)
        args = (q, h, wq_cat, wk_cat, wv_cat, wo_cat)

    # VMEM budget: double-buffered activation/weight/output blocks + f32
    # intermediates (qp/kp/vp, one (nq, T) scores tensor, head slab).  Clamp to
    # 64 MiB so the limit is valid on v7x too.
    act_itm = 2 if mxu_dtype is not None else jnp.dtype(out_dtype).itemsize
    act_bytes = 2 * (T * D + (0 if self_attn else nq_tile * D)) * act_itm
    w_bytes = 2 * (2 * D * H * dk + D * H * dv + H * dv * D) * act_itm
    out_bytes = 2 * nq_tile * D * jnp.dtype(out_dtype).itemsize
    interm_bytes = 4 * (T * (H * dk + H * dv) + nq_tile * (H * dk + 2 * H * dv)
                        + 2 * nq_tile * T + nq_tile * D)
    vmem_limit = int(min(max(2 * (act_bytes + w_bytes + out_bytes + interm_bytes),
                             32 * 1024 * 1024), 64 * 1024 * 1024))

    # TODO(synk): mask path (U[mask] = -inf then zeroing masked attention) not
    # implemented.
    # TODO(synk): for graph_size T large enough that the (1, T, D) block + f32
    # intermediates exceed the VMEM limit (esp. v7x's 64 MiB physical), tile the
    # T axis with an online-softmax inner loop instead of whole-T blocks.
    # TODO(synk): if the deployed D (< 128) matters, present a lane-dense output
    # slab (fold (Nq, D) so the last dim is a multiple of 128) to avoid masked
    # vst.msk partial stores.
    return pl.pallas_call(
        kernel,
        out_shape=jax.ShapeDtypeStruct((B, Nq, D), out_dtype),
        grid_spec=pltpu.PrefetchScalarGridSpec(
            num_scalar_prefetch=0,
            grid=(B, n_nq),
            in_specs=in_specs,
            out_specs=pl.BlockSpec((1, nq_tile, D), lambda b, t: (b, t, 0)),
        ),
        compiler_params=pltpu.CompilerParams(
            dimension_semantics=("parallel", "parallel"),
            vmem_limit_bytes=vmem_limit),
    )(*args)


def _reference(q, h, wq, wk, wv, wo, norm_factor):
    # Pure-JAX mirror of the PyTorch forward (no mask).
    hp = lax.Precision.HIGHEST
    Q = jnp.einsum('bnd,hdk->hbnk', q, wq, precision=hp)
    K = jnp.einsum('btd,hdk->hbtk', h, wk, precision=hp)
    V = jnp.einsum('btd,hdv->hbtv', h, wv, precision=hp)
    U = norm_factor * jnp.einsum('hbnk,hbtk->hbnt', Q, K, precision=hp)
    attn = jax.nn.softmax(U, axis=-1)
    heads = jnp.einsum('hbnt,hbtv->hbnv', attn, V, precision=hp)
    out = jnp.einsum('hbnv,hvd->bnd', heads, wo, precision=hp)
    return out


if __name__ == "__main__":
    def uinit(k, shape):
        # PyTorch init: uniform(-stdv, stdv), stdv = 1/sqrt(last dim).
        stdv = 1.0 / math.sqrt(shape[-1])
        return jax.random.uniform(k, shape, jnp.float32, -stdv, stdv)

    def make(key, B, Nq, T, D, H):
        dk = dv = D // H
        ks = jax.random.split(key, 6)
        q = jax.random.normal(ks[0], (B, Nq, D), jnp.float32)
        h = jax.random.normal(ks[1], (B, T, D), jnp.float32)
        wq = uinit(ks[2], (H, D, dk))
        wk = uinit(ks[3], (H, D, dk))
        wv = uinit(ks[4], (H, D, dv))
        wo = uinit(ks[5], (H, dv, D))
        return q, h, wq, wk, wv, wo

    key = jax.random.PRNGKey(0)
    k1, k2, k3 = jax.random.split(key, 3)

    def check(out, ref, atol, rtol, tag):
        err = float(jnp.max(jnp.abs(out - ref)))
        assert jnp.allclose(out, ref, atol=atol, rtol=rtol), \
            f"{tag}: max abs err {err}"

    # 1) Self-attention (h=None), f32.
    B, Nq, D, H = 2, 16, 32, 8
    q, _, wq, wk, wv, wo = make(k1, B, Nq, Nq, D, H)
    out = jax.block_until_ready(multi_head_attention(q, None, wq, wk, wv, wo))
    ref = _reference(q, q, wq, wk, wv, wo, 1.0 / math.sqrt(D // H))
    assert out.shape == (B, Nq, D)
    check(out, ref, 1e-4, 1e-4, "self-attn f32")

    # 2) Cross-attention (h != q), f32.
    B, Nq, T, D, H = 2, 16, 24, 32, 8
    q, h, wq, wk, wv, wo = make(k2, B, Nq, T, D, H)
    out = jax.block_until_ready(multi_head_attention(q, h, wq, wk, wv, wo))
    ref = _reference(q, h, wq, wk, wv, wo, 1.0 / math.sqrt(D // H))
    check(out, ref, 1e-4, 1e-4, "cross-attn f32")

    # 3) Self-attention with a tiled query grid axis (exercises in-kernel q slice).
    B, Nq, D, H = 1, 256, 32, 8
    q, _, wq, wk, wv, wo = make(k3, B, Nq, Nq, D, H)
    out = jax.block_until_ready(multi_head_attention(q, None, wq, wk, wv, wo))
    ref = _reference(q, q, wq, wk, wv, wo, 1.0 / math.sqrt(D // H))
    check(out, ref, 1e-3, 1e-3, "self-attn tiled f32")

    # 4) bf16 MXU-operand path (accumulation + softmax stay f32), loose tolerance.
    B, Nq, D, H = 2, 16, 32, 8
    q, _, wq, wk, wv, wo = make(k1, B, Nq, Nq, D, H)
    out_bf = jax.block_until_ready(
        multi_head_attention(q, None, wq, wk, wv, wo, mxu_dtype=jnp.bfloat16))
    ref = _reference(q, q, wq, wk, wv, wo, 1.0 / math.sqrt(D // H))
    assert out_bf.dtype == jnp.float32
    check(out_bf, ref, 7.5e-2, 7.5e-2, "self-attn bf16")

    print("KERNEL_OK")
</pallas_src>

<mosaic_0001>
module attributes {stable_mosaic.version = 11 : i64} {
  func.func @_mha_kernel(%arg0: i32, %arg1: i32, %arg2: memref<1x16x32xf32, #tpu.memory_space<vmem>>, %arg3: memref<32x32xf32, #tpu.memory_space<vmem>>, %arg4: memref<32x32xf32, #tpu.memory_space<vmem>>, %arg5: memref<32x32xf32, #tpu.memory_space<vmem>>, %arg6: memref<32x32xf32, #tpu.memory_space<vmem>>, %arg7: memref<1x16x32xf32, #tpu.memory_space<vmem>>) attributes {dimension_semantics = [#tpu.dimension_semantics<parallel>, #tpu.dimension_semantics<parallel>], iteration_bounds = array<i64: 2, 1>, scalar_prefetch = 0 : i64, scratch_operands = 0 : i64, tpu.core_type = #tpu.core_type<tc>, window_params = [{transform_indices = @transform_0, window_bounds = array<i64: 1, 16, 32>}, {pipeline_mode = #tpu.pipeline_mode<synchronous>, transform_indices = @transform_1, window_bounds = array<i64: 32, 32>}, {pipeline_mode = #tpu.pipeline_mode<synchronous>, transform_indices = @transform_2, window_bounds = array<i64: 32, 32>}, {pipeline_mode = #tpu.pipeline_mode<synchronous>, transform_indices = @transform_3, window_bounds = array<i64: 32, 32>}, {pipeline_mode = #tpu.pipeline_mode<synchronous>, transform_indices = @transform_4, window_bounds = array<i64: 32, 32>}, {transform_indices = @transform_5, window_bounds = array<i64: 1, 16, 32>}]} {
    %c0 = arith.constant 0 : index
    %c0_0 = arith.constant 0 : index
    %c0_1 = arith.constant 0 : index
    %0 = vector.load %arg2[%c0, %c0_0, %c0_1] : memref<1x16x32xf32, #tpu.memory_space<vmem>>, vector<1x16x32xf32>
    %1 = vector.shape_cast %0 : vector<1x16x32xf32> to vector<16x32xf32>
    %c0_2 = arith.constant 0 : index
    %c0_3 = arith.constant 0 : index
    %2 = vector.load %arg3[%c0_2, %c0_3] : memref<32x32xf32, #tpu.memory_space<vmem>>, vector<32x32xf32>
    %cst = arith.constant dense<0.000000e+00> : vector<16x32xf32>
    %3 = tpu.matmul %1, %2, %cst {dimension_numbers = #tpu.dot_dimension_numbers<[1], [0], [0], [1], [0, 0, 1, 1], [], []>} : vector<16x32xf32>, vector<32x32xf32>, vector<16x32xf32> -> vector<16x32xf32>
    %c0_4 = arith.constant 0 : index
    %c0_5 = arith.constant 0 : index
    %4 = vector.load %arg4[%c0_4, %c0_5] : memref<32x32xf32, #tpu.memory_space<vmem>>, vector<32x32xf32>
    %cst_6 = arith.constant dense<0.000000e+00> : vector<16x32xf32>
    %5 = tpu.matmul %1, %4, %cst_6 {dimension_numbers = #tpu.dot_dimension_numbers<[1], [0], [0], [1], [0, 0, 1, 1], [], []>} : vector<16x32xf32>, vector<32x32xf32>, vector<16x32xf32> -> vector<16x32xf32>
    %c0_7 = arith.constant 0 : index
    %c0_8 = arith.constant 0 : index
    %6 = vector.load %arg5[%c0_7, %c0_8] : memref<32x32xf32, #tpu.memory_space<vmem>>, vector<32x32xf32>
    %cst_9 = arith.constant dense<0.000000e+00> : vector<16x32xf32>
    %7 = tpu.matmul %1, %6, %cst_9 {dimension_numbers = #tpu.dot_dimension_numbers<[1], [0], [0], [1], [0, 0, 1, 1], [], []>} : vector<16x32xf32>, vector<32x32xf32>, vector<16x32xf32> -> vector<16x32xf32>
    %cst_10 = arith.constant 5.000000e-01 : f32
    %8 = vector.broadcast %cst_10 : f32 to vector<16x32xf32>
    %9 = arith.mulf %3, %8 : vector<16x32xf32>
    %10 = vector.extract_strided_slice %9 {offsets = [0, 0], sizes = [16, 4], strides = [1, 1]} : vector<16x32xf32> to vector<16x4xf32>
    %11 = vector.extract_strided_slice %5 {offsets = [0, 0], sizes = [16, 4], strides = [1, 1]} : vector<16x32xf32> to vector<16x4xf32>
    %12 = vector.extract_strided_slice %7 {offsets = [0, 0], sizes = [16, 4], strides = [1, 1]} : vector<16x32xf32> to vector<16x4xf32>
    %cst_11 = arith.constant dense<0.000000e+00> : vector<16x16xf32>
    %13 = tpu.matmul %10, %11, %cst_11 {dimension_numbers = #tpu.dot_dimension_numbers<[1], [1], [0], [0], [0, 0, 1, 0], [], []>} : vector<16x4xf32>, vector<16x4xf32>, vector<16x16xf32> -> vector<16x16xf32>
    %cst_12 = arith.constant dense<0xFF800000> : vector<16xf32>
    %14 = vector.multi_reduction <maximumf>, %13, %cst_12 [1] : vector<16x16xf32> to vector<16xf32>
    %15 = vector.shape_cast %14 : vector<16xf32> to vector<16x1xf32>
    %16 = vector.broadcast %15 : vector<16x1xf32> to vector<16x16xf32>
    %17 = arith.subf %13, %16 : vector<16x16xf32>
    %18 = math.exp %17 : vector<16x16xf32>
    %cst_13 = arith.constant dense<0.000000e+00> : vector<16xf32>
    %19 = vector.multi_reduction <add>, %18, %cst_13 [1] : vector<16x16xf32> to vector<16xf32>
    %20 = vector.shape_cast %19 : vector<16xf32> to vector<16x1xf32>
    %21 = tpu.reciprocal %20 {approx = true} : vector<16x1xf32> -> vector<16x1xf32>
    %22 = arith.mulf %20, %21 : vector<16x1xf32>
    %cst_14 = arith.constant 2.000000e+00 : f32
    %23 = vector.broadcast %cst_14 : f32 to vector<16x1xf32>
    %24 = arith.subf %23, %22 : vector<16x1xf32>
    %25 = arith.mulf %21, %24 : vector<16x1xf32>
    %cst_15 = arith.constant dense<0.000000e+00> : vector<16x4xf32>
    %26 = tpu.matmul %18, %12, %cst_15 {dimension_numbers = #tpu.dot_dimension_numbers<[1], [0], [0], [1], [0, 0, 1, 1], [], []>} : vector<16x16xf32>, vector<16x4xf32>, vector<16x4xf32> -> vector<16x4xf32>
    %27 = vector.broadcast %25 : vector<16x1xf32> to vector<16x4xf32>
    %28 = arith.mulf %26, %27 : vector<16x4xf32>
    %29 = vector.extract_strided_slice %9 {offsets = [0, 4], sizes = [16, 4], strides = [1, 1]} : vector<16x32xf32> to vector<16x4xf32>
    %30 = vector.extract_strided_slice %5 {offsets = [0, 4], sizes = [16, 4], strides = [1, 1]} : vector<16x32xf32> to vector<16x4xf32>
    %31 = vector.extract_strided_slice %7 {offsets = [0, 4], sizes = [16, 4], strides = [1, 1]} : vector<16x32xf32> to vector<16x4xf32>
    %cst_16 = arith.constant dense<0.000000e+00> : vector<16x16xf32>
    %32 = tpu.matmul %29, %30, %cst_16 {dimension_numbers = #tpu.dot_dimension_numbers<[1], [1], [0], [0], [0, 0, 1, 0], [], []>} : vector<16x4xf32>, vector<16x4xf32>, vector<16x16xf32> -> vector<16x16xf32>
    %cst_17 = arith.constant dense<0xFF800000> : vector<16xf32>
    %33 = vector.multi_reduction <maximumf>, %32, %cst_17 [1] : vector<16x16xf32> to vector<16xf32>
    %34 = vector.shape_cast %33 : vector<16xf32> to vector<16x1xf32>
    %35 = vector.broadcast %34 : vector<16x1xf32> to vector<16x16xf32>
    %36 = arith.subf %32, %35 : vector<16x16xf32>
    %37 = math.exp %36 : vector<16x16xf32>
    %cst_18 = arith.constant dense<0.000000e+00> : vector<16xf32>
    %38 = vector.multi_reduction <add>, %37, %cst_18 [1] : vector<16x16xf32> to vector<16xf32>
    %39 = vector.shape_cast %38 : vector<16xf32> to vector<16x1xf32>
    %40 = tpu.reciprocal %39 {approx = true} : vector<16x1xf32> -> vector<16x1xf32>
    %41 = arith.mulf %39, %40 : vector<16x1xf32>
    %cst_19 = arith.constant 2.000000e+00 : f32
    %42 = vector.broadcast %cst_19 : f32 to vector<16x1xf32>
    %43 = arith.subf %42, %41 : vector<16x1xf32>
    %44 = arith.mulf %40, %43 : vector<16x1xf32>
    %cst_20 = arith.constant dense<0.000000e+00> : vector<16x4xf32>
    %45 = tpu.matmul %37, %31, %cst_20 {dimension_numbers = #tpu.dot_dimension_numbers<[1], [0], [0], [1], [0, 0, 1, 1], [], []>} : vector<16x16xf32>, vector<16x4xf32>, vector<16x4xf32> -> vector<16x4xf32>
    %46 = vector.broadcast %44 : vector<16x1xf32> to vector<16x4xf32>
    %47 = arith.mulf %45, %46 : vector<16x4xf32>
    %48 = vector.extract_strided_slice %9 {offsets = [0, 8], sizes = [16, 4], strides = [1, 1]} : vector<16x32xf32> to vector<16x4xf32>
    %49 = vector.extract_strided_slice %5 {offsets = [0, 8], sizes = [16, 4], strides = [1, 1]} : vector<16x32xf32> to vector<16x4xf32>
    %50 = vector.extract_strided_slice %7 {offsets = [0, 8], sizes = [16, 4], strides = [1, 1]} : vector<16x32xf32> to vector<16x4xf32>
    %cst_21 = arith.constant dense<0.000000e+00> : vector<16x16xf32>
    %51 = tpu.matmul %48, %49, %cst_21 {dimension_numbers = #tpu.dot_dimension_numbers<[1], [1], [0], [0], [0, 0, 1, 0], [], []>} : vector<16x4xf32>, vector<16x4xf32>, vector<16x16xf32> -> vector<16x16xf32>
    %cst_22 = arith.constant dense<0xFF800000> : vector<16xf32>
    %52 = vector.multi_reduction <maximumf>, %51, %cst_22 [1] : vector<16x16xf32> to vector<16xf32>
    %53 = vector.shape_cast %52 : vector<16xf32> to vector<16x1xf32>
    %54 = vector.broadcast %53 : vector<16x1xf32> to vector<16x16xf32>
    %55 = arith.subf %51, %54 : vector<16x16xf32>
    %56 = math.exp %55 : vector<16x16xf32>
    %cst_23 = arith.constant dense<0.000000e+00> : vector<16xf32>
    %57 = vector.multi_reduction <add>, %56, %cst_23 [1] : vector<16x16xf32> to vector<16xf32>
    %58 = vector.shape_cast %57 : vector<16xf32> to vector<16x1xf32>
    %59 = tpu.reciprocal %58 {approx = true} : vector<16x1xf32> -> vector<16x1xf32>
    %60 = arith.mulf %58, %59 : vector<16x1xf32>
    %cst_24 = arith.constant 2.000000e+00 : f32
    %61 = vector.broadcast %cst_24 : f32 to vector<16x1xf32>
    %62 = arith.subf %61, %60 : vector<16x1xf32>
    %63 = arith.mulf %59, %62 : vector<16x1xf32>
    %cst_25 = arith.constant dense<0.000000e+00> : vector<16x4xf32>
    %64 = tpu.matmul %56, %50, %cst_25 {dimension_numbers = #tpu.dot_dimension_numbers<[1], [0], [0], [1], [0, 0, 1, 1], [], []>} : vector<16x16xf32>, vector<16x4xf32>, vector<16x4xf32> -> vector<16x4xf32>
    %65 = vector.broadcast %63 : vector<16x1xf32> to vector<16x4xf32>
    %66 = arith.mulf %64, %65 : vector<16x4xf32>
    %67 = vector.extract_strided_slice %9 {offsets = [0, 12], sizes = [16, 4], strides = [1, 1]} : vector<16x32xf32> to vector<16x4xf32>
    %68 = vector.extract_strided_slice %5 {offsets = [0, 12], sizes = [16, 4], strides = [1, 1]} : vector<16x32xf32> to vector<16x4xf32>
    %69 = vector.extract_strided_slice %7 {offsets = [0, 12], sizes = [16, 4], strides = [1, 1]} : vector<16x32xf32> to vector<16x4xf32>
    %cst_26 = arith.constant dense<0.000000e+00> : vector<16x16xf32>
    %70 = tpu.matmul %67, %68, %cst_26 {dimension_numbers = #tpu.dot_dimension_numbers<[1], [1], [0], [0], [0, 0, 1, 0], [], []>} : vector<16x4xf32>, vector<16x4xf32>, vector<16x16xf32> -> vector<16x16xf32>
    %cst_27 = arith.constant dense<0xFF800000> : vector<16xf32>
    %71 = vector.multi_reduction <maximumf>, %70, %cst_27 [1] : vector<16x16xf32> to vector<16xf32>
    %72 = vector.shape_cast %71 : vector<16xf32> to vector<16x1xf32>
    %73 = vector.broadcast %72 : vector<16x1xf32> to vector<16x16xf32>
    %74 = arith.subf %70, %73 : vector<16x16xf32>
    %75 = math.exp %74 : vector<16x16xf32>
    %cst_28 = arith.constant dense<0.000000e+00> : vector<16xf32>
    %76 = vector.multi_reduction <add>, %75, %cst_28 [1] : vector<16x16xf32> to vector<16xf32>
    %77 = vector.shape_cast %76 : vector<16xf32> to vector<16x1xf32>
    %78 = tpu.reciprocal %77 {approx = true} : vector<16x1xf32> -> vector<16x1xf32>
    %79 = arith.mulf %77, %78 : vector<16x1xf32>
    %cst_29 = arith.constant 2.000000e+00 : f32
    %80 = vector.broadcast %cst_29 : f32 to vector<16x1xf32>
    %81 = arith.subf %80, %79 : vector<16x1xf32>
    %82 = arith.mulf %78, %81 : vector<16x1xf32>
    %cst_30 = arith.constant dense<0.000000e+00> : vector<16x4xf32>
    %83 = tpu.matmul %75, %69, %cst_30 {dimension_numbers = #tpu.dot_dimension_numbers<[1], [0], [0], [1], [0, 0, 1, 1], [], []>} : vector<16x16xf32>, vector<16x4xf32>, vector<16x4xf32> -> vector<16x4xf32>
    %84 = vector.broadcast %82 : vector<16x1xf32> to vector<16x4xf32>
    %85 = arith.mulf %83, %84 : vector<16x4xf32>
    %86 = vector.extract_strided_slice %9 {offsets = [0, 16], sizes = [16, 4], strides = [1, 1]} : vector<16x32xf32> to vector<16x4xf32>
    %87 = vector.extract_strided_slice %5 {offsets = [0, 16], sizes = [16, 4], strides = [1, 1]} : vector<16x32xf32> to vector<16x4xf32>
    %88 = vector.extract_strided_slice %7 {offsets = [0, 16], sizes = [16, 4], strides = [1, 1]} : vector<16x32xf32> to vector<16x4xf32>
    %cst_31 = arith.constant dense<0.000000e+00> : vector<16x16xf32>
    %89 = tpu.matmul %86, %87, %cst_31 {dimension_numbers = #tpu.dot_dimension_numbers<[1], [1], [0], [0], [0, 0, 1, 0], [], []>} : vector<16x4xf32>, vector<16x4xf32>, vector<16x16xf32> -> vector<16x16xf32>
    %cst_32 = arith.constant dense<0xFF800000> : vector<16xf32>
    %90 = vector.multi_reduction <maximumf>, %89, %cst_32 [1] : vector<16x16xf32> to vector<16xf32>
    %91 = vector.shape_cast %90 : vector<16xf32> to vector<16x1xf32>
    %92 = vector.broadcast %91 : vector<16x1xf32> to vector<16x16xf32>
    %93 = arith.subf %89, %92 : vector<16x16xf32>
    %94 = math.exp %93 : vector<16x16xf32>
    %cst_33 = arith.constant dense<0.000000e+00> : vector<16xf32>
    %95 = vector.multi_reduction <add>, %94, %cst_33 [1] : vector<16x16xf32> to vector<16xf32>
    %96 = vector.shape_cast %95 : vector<16xf32> to vector<16x1xf32>
    %97 = tpu.reciprocal %96 {approx = true} : vector<16x1xf32> -> vector<16x1xf32>
    %98 = arith.mulf %96, %97 : vector<16x1xf32>
    %cst_34 = arith.constant 2.000000e+00 : f32
    %99 = vector.broadcast %cst_34 : f32 to vector<16x1xf32>
    %100 = arith.subf %99, %98 : vector<16x1xf32>
    %101 = arith.mulf %97, %100 : vector<16x1xf32>
    %cst_35 = arith.constant dense<0.000000e+00> : vector<16x4xf32>
    %102 = tpu.matmul %94, %88, %cst_35 {dimension_numbers = #tpu.dot_dimension_numbers<[1], [0], [0], [1], [0, 0, 1, 1], [], []>} : vector<16x16xf32>, vector<16x4xf32>, vector<16x4xf32> -> vector<16x4xf32>
    %103 = vector.broadcast %101 : vector<16x1xf32> to vector<16x4xf32>
    %104 = arith.mulf %102, %103 : vector<16x4xf32>
    %105 = vector.extract_strided_slice %9 {offsets = [0, 20], sizes = [16, 4], strides = [1, 1]} : vector<16x32xf32> to vector<16x4xf32>
    %106 = vector.extract_strided_slice %5 {offsets = [0, 20], sizes = [16, 4], strides = [1, 1]} : vector<16x32xf32> to vector<16x4xf32>
    %107 = vector.extract_strided_slice %7 {offsets = [0, 20], sizes = [16, 4], strides = [1, 1]} : vector<16x32xf32> to vector<16x4xf32>
    %cst_36 = arith.constant dense<0.000000e+00> : vector<16x16xf32>
    %108 = tpu.matmul %105, %106, %cst_36 {dimension_numbers = #tpu.dot_dimension_numbers<[1], [1], [0], [0], [0, 0, 1, 0], [], []>} : vector<16x4xf32>, vector<16x4xf32>, vector<16x16xf32> -> vector<16x16xf32>
    %cst_37 = arith.constant dense<0xFF800000> : vector<16xf32>
    %109 = vector.multi_reduction <maximumf>, %108, %cst_37 [1] : vector<16x16xf32> to vector<16xf32>
    %110 = vector.shape_cast %109 : vector<16xf32> to vector<16x1xf32>
    %111 = vector.broadcast %110 : vector<16x1xf32> to vector<16x16xf32>
    %112 = arith.subf %108, %111 : vector<16x16xf32>
    %113 = math.exp %112 : vector<16x16xf32>
    %cst_38 = arith.constant dense<0.000000e+00> : vector<16xf32>
    %114 = vector.multi_reduction <add>, %113, %cst_38 [1] : vector<16x16xf32> to vector<16xf32>
    %115 = vector.shape_cast %114 : vector<16xf32> to vector<16x1xf32>
    %116 = tpu.reciprocal %115 {approx = true} : vector<16x1xf32> -> vector<16x1xf32>
    %117 = arith.mulf %115, %116 : vector<16x1xf32>
    %cst_39 = arith.constant 2.000000e+00 : f32
    %118 = vector.broadcast %cst_39 : f32 to vector<16x1xf32>
    %119 = arith.subf %118, %117 : vector<16x1xf32>
    %120 = arith.mulf %116, %119 : vector<16x1xf32>
    %cst_40 = arith.constant dense<0.000000e+00> : vector<16x4xf32>
    %121 = tpu.matmul %113, %107, %cst_40 {dimension_numbers = #tpu.dot_dimension_numbers<[1], [0], [0], [1], [0, 0, 1, 1], [], []>} : vector<16x16xf32>, vector<16x4xf32>, vector<16x4xf32> -> vector<16x4xf32>
    %122 = vector.broadcast %120 : vector<16x1xf32> to vector<16x4xf32>
    %123 = arith.mulf %121, %122 : vector<16x4xf32>
    %124 = vector.extract_strided_slice %9 {offsets = [0, 24], sizes = [16, 4], strides = [1, 1]} : vector<16x32xf32> to vector<16x4xf32>
    %125 = vector.extract_strided_slice %5 {offsets = [0, 24], sizes = [16, 4], strides = [1, 1]} : vector<16x32xf32> to vector<16x4xf32>
    %126 = vector.extract_strided_slice %7 {offsets = [0, 24], sizes = [16, 4], strides = [1, 1]} : vector<16x32xf32> to vector<16x4xf32>
    %cst_41 = arith.constant dense<0.000000e+00> : vector<16x16xf32>
    %127 = tpu.matmul %124, %125, %cst_41 {dimension_numbers = #tpu.dot_dimension_numbers<[1], [1], [0], [0], [0, 0, 1, 0], [], []>} : vector<16x4xf32>, vector<16x4xf32>, vector<16x16xf32> -> vector<16x16xf32>
    %cst_42 = arith.constant dense<0xFF800000> : vector<16xf32>
    %128 = vector.multi_reduction <maximumf>, %127, %cst_42 [1] : vector<16x16xf32> to vector<16xf32>
    %129 = vector.shape_cast %128 : vector<16xf32> to vector<16x1xf32>
    %130 = vector.broadcast %129 : vector<16x1xf32> to vector<16x16xf32>
    %131 = arith.subf %127, %130 : vector<16x16xf32>
    %132 = math.exp %131 : vector<16x16xf32>
    %cst_43 = arith.constant dense<0.000000e+00> : vector<16xf32>
    %133 = vector.multi_reduction <add>, %132, %cst_43 [1] : vector<16x16xf32> to vector<16xf32>
    %134 = vector.shape_cast %133 : vector<16xf32> to vector<16x1xf32>
    %135 = tpu.reciprocal %134 {approx = true} : vector<16x1xf32> -> vector<16x1xf32>
    %136 = arith.mulf %134, %135 : vector<16x1xf32>
    %cst_44 = arith.constant 2.000000e+00 : f32
    %137 = vector.broadcast %cst_44 : f32 to vector<16x1xf32>
    %138 = arith.subf %137, %136 : vector<16x1xf32>
    %139 = arith.mulf %135, %138 : vector<16x1xf32>
    %cst_45 = arith.constant dense<0.000000e+00> : vector<16x4xf32>
    %140 = tpu.matmul %132, %126, %cst_45 {dimension_numbers = #tpu.dot_dimension_numbers<[1], [0], [0], [1], [0, 0, 1, 1], [], []>} : vector<16x16xf32>, vector<16x4xf32>, vector<16x4xf32> -> vector<16x4xf32>
    %141 = vector.broadcast %139 : vector<16x1xf32> to vector<16x4xf32>
    %142 = arith.mulf %140, %141 : vector<16x4xf32>
    %143 = vector.extract_strided_slice %9 {offsets = [0, 28], sizes = [16, 4], strides = [1, 1]} : vector<16x32xf32> to vector<16x4xf32>
    %144 = vector.extract_strided_slice %5 {offsets = [0, 28], sizes = [16, 4], strides = [1, 1]} : vector<16x32xf32> to vector<16x4xf32>
    %145 = vector.extract_strided_slice %7 {offsets = [0, 28], sizes = [16, 4], strides = [1, 1]} : vector<16x32xf32> to vector<16x4xf32>
    %cst_46 = arith.constant dense<0.000000e+00> : vector<16x16xf32>
    %146 = tpu.matmul %143, %144, %cst_46 {dimension_numbers = #tpu.dot_dimension_numbers<[1], [1], [0], [0], [0, 0, 1, 0], [], []>} : vector<16x4xf32>, vector<16x4xf32>, vector<16x16xf32> -> vector<16x16xf32>
    %cst_47 = arith.constant dense<0xFF800000> : vector<16xf32>
    %147 = vector.multi_reduction <maximumf>, %146, %cst_47 [1] : vector<16x16xf32> to vector<16xf32>
    %148 = vector.shape_cast %147 : vector<16xf32> to vector<16x1xf32>
    %149 = vector.broadcast %148 : vector<16x1xf32> to vector<16x16xf32>
    %150 = arith.subf %146, %149 : vector<16x16xf32>
    %151 = math.exp %150 : vector<16x16xf32>
    %cst_48 = arith.constant dense<0.000000e+00> : vector<16xf32>
    %152 = vector.multi_reduction <add>, %151, %cst_48 [1] : vector<16x16xf32> to vector<16xf32>
    %153 = vector.shape_cast %152 : vector<16xf32> to vector<16x1xf32>
    %154 = tpu.reciprocal %153 {approx = true} : vector<16x1xf32> -> vector<16x1xf32>
    %155 = arith.mulf %153, %154 : vector<16x1xf32>
    %cst_49 = arith.constant 2.000000e+00 : f32
    %156 = vector.broadcast %cst_49 : f32 to vector<16x1xf32>
    %157 = arith.subf %156, %155 : vector<16x1xf32>
    %158 = arith.mulf %154, %157 : vector<16x1xf32>
    %cst_50 = arith.constant dense<0.000000e+00> : vector<16x4xf32>
    %159 = tpu.matmul %151, %145, %cst_50 {dimension_numbers = #tpu.dot_dimension_numbers<[1], [0], [0], [1], [0, 0, 1, 1], [], []>} : vector<16x16xf32>, vector<16x4xf32>, vector<16x4xf32> -> vector<16x4xf32>
    %160 = vector.broadcast %158 : vector<16x1xf32> to vector<16x4xf32>
    %161 = arith.mulf %159, %160 : vector<16x4xf32>
    %162 = tpu.concatenate %28, %47, %66, %85, %104, %123, %142, %161 in 1 : vector<16x4xf32>, vector<16x4xf32>, vector<16x4xf32>, vector<16x4xf32>, vector<16x4xf32>, vector<16x4xf32>, vector<16x4xf32>, vector<16x4xf32> -> vector<16x32xf32>
    %c0_51 = arith.constant 0 : index
    %c0_52 = arith.constant 0 : index
    %163 = vector.load %arg6[%c0_51, %c0_52] : memref<32x32xf32, #tpu.memory_space<vmem>>, vector<32x32xf32>
    %cst_53 = arith.constant dense<0.000000e+00> : vector<16x32xf32>
    %164 = tpu.matmul %162, %163, %cst_53 {dimension_numbers = #tpu.dot_dimension_numbers<[1], [0], [0], [1], [0, 0, 1, 1], [], []>} : vector<16x32xf32>, vector<32x32xf32>, vector<16x32xf32> -> vector<16x32xf32>
    %c0_54 = arith.constant 0 : index
    %c0_55 = arith.constant 0 : index
    %c0_56 = arith.constant 0 : index
    %165 = vector.load %arg7[%c0_54, %c0_55, %c0_56] : memref<1x16x32xf32, #tpu.memory_space<vmem>>, vector<1x16x32xf32>
    %166 = vector.shape_cast %165 : vector<1x16x32xf32> to vector<16x32xf32>
    %167 = vector.shape_cast %164 : vector<16x32xf32> to vector<1x16x32xf32>
    tpu.vector_store %arg7[%c0_54, %c0_55, %c0_56], %167 {strides = array<i32>} : memref<1x16x32xf32, #tpu.memory_space<vmem>>, vector<1x16x32xf32>,
    return
  }
  func.func @transform_0(%arg0: i32, %arg1: i32) -> (i32, i32, i32) {
    %c0_i32 = arith.constant 0 : i32
    %c0_i32_0 = arith.constant 0 : i32
    %c0_i32_1 = arith.constant 0 : i32
    return %arg0, %c0_i32, %c0_i32_0 : i32, i32, i32
  }
  func.func @transform_1(%arg0: i32, %arg1: i32) -> (i32, i32) {
    %c0_i32 = arith.constant 0 : i32
    %c0_i32_0 = arith.constant 0 : i32
    %c0_i32_1 = arith.constant 0 : i32
    return %c0_i32, %c0_i32_0 : i32, i32
  }
  func.func @transform_2(%arg0: i32, %arg1: i32) -> (i32, i32) {
    %c0_i32 = arith.constant 0 : i32
    %c0_i32_0 = arith.constant 0 : i32
    %c0_i32_1 = arith.constant 0 : i32
    return %c0_i32, %c0_i32_0 : i32, i32
  }
  func.func @transform_3(%arg0: i32, %arg1: i32) -> (i32, i32) {
    %c0_i32 = arith.constant 0 : i32
    %c0_i32_0 = arith.constant 0 : i32
    %c0_i32_1 = arith.constant 0 : i32
    return %c0_i32, %c0_i32_0 : i32, i32
  }
  func.func @transform_4(%arg0: i32, %arg1: i32) -> (i32, i32) {
    %c0_i32 = arith.constant 0 : i32
    %c0_i32_0 = arith.constant 0 : i32
    %c0_i32_1 = arith.constant 0 : i32
    return %c0_i32, %c0_i32_0 : i32, i32
  }
  func.func @transform_5(%arg0: i32, %arg1: i32) -> (i32, i32, i32) {
    %c0_i32 = arith.constant 0 : i32
    %c0_i32_0 = arith.constant 0 : i32
    return %arg0, %arg1, %c0_i32 : i32, i32, i32
  }
}

</mosaic_0001>

<bundles_post_ra>
// kernel: tpu_custom_call.1
= control target key start
LH: loop header
LB: loop body
LE: loop exit
PB: predicated region body
PF: predicated region fallthrough
CT: control target
= control target key end

     0   :  { %s2489_s0 = inlined_call_operand.hbm [shape: f32[2,16,32], index: 0, kind: input, shape index: {}]   ;;  %s2490_s1 = inlined_call_operand.hbm [shape: f32[32,32], index: 1, kind: input, shape index: {}]   ;;  %s2491_s2 = inlined_call_operand.hbm [shape: f32[32,32], index: 2, kind: input, shape index: {}]   ;;  %s2492_s3 = inlined_call_operand.hbm [shape: f32[32,32], index: 3, kind: input, shape index: {}]   ;;  %s2493_s4 = inlined_call_operand.hbm [shape: f32[32,32], index: 4, kind: input, shape index: {}]   ;;  %s2494_s5 = inlined_call_operand.hbm [shape: f32[2,16,32], index: 5, kind: output, shape index: {}]  }
   0x1   :  { %2497 = sst [smem:[#allocation16_spill]] %s2490_s1 }
   0x2   :  { %2498 = sst [smem:[#allocation17_spill]] %s2491_s2 }
   0x3   :  { %10 = vsyncpa [#allocation3], 0 }
   0x4   :  { %12 = vsyncpa [#allocation3 + $0x1], 0 }
   0x5   :  { %13 = vsyncpa [#allocation6], 0 }
   0x6   :  { %14 = vsyncpa [#allocation9], 0 }
   0x7   :  { %15 = vsyncpa [#allocation4], 0 }
   0x8   :  { %17 = vsyncpa [#allocation4 + $0x1], 0  ;;  %s2071_s18 = smov 0   ;;  %s2073_s19 = smov 0  }
   0x9   :  { %s2075_s20 = smov 0   ;;  %s2077_s21 = smov 0  }
   0xa   :  { %s2079_s22 = smov 0   ;;  %s2081_s23 = smov 0  }
   0xb LB: > { %s1478_s24 = sadd.s32 4294967295, %s2018_s23   ;;  %s1479_s25 = sadd.s32 4294967294, %s2018_s23   ;;  %s2018_s23 = sphi %s2081_s23, %s23_s23   ;;  %s2014_s22 = sphi %s2079_s22, %s2513_s22   ;;  %s2010_s21 = sphi %s2077_s21, %s2512_s21   ;;  %s2006_s20 = sphi %s2075_s20, %s2511_s20   ;;  %s2002_s19 = sphi %s2073_s19, %s2510_s19   ;;  %s1998_s18 = sphi %s2071_s18, %s2509_s18  }
   0xc   : > { %p55_p0 = scmp.ne.s32.totalorder %s2002_s19, %s1998_s18  ;;  %p2107_p1 = scmp.eq.s32.totalorder %s1478_s24, 0 }
   0xd   : > { %p171_p2 = scmp.eq.s32.totalorder %s1479_s25, 1  ;;  %p1480_p4 = scmp.ge.s32.totalorder %s2018_s23, 1 }
   0xe   : > { %p2113_p3 = por %p2107_p1, %p55_p0  ;;  %p178_p6 = scmp.lt.s32.totalorder %s2018_s23, 3 }
   0xf   : > { %p2118_p5 = por %p171_p2, %p55_p0  ;;  %s2502_s1 = sld [smem:[#allocation16_spill]] }
  0x10   : > { %p2126_p7 = pnand %p1480_p4, %p178_p6  ;;  %s2020_s8 = smov [#allocation5]  }
  0x11   : > { %s191_s9 = sshll.u32 %s2020_s8, 4  ;;  %p1485_p10 = scmp.ge.s32.totalorder %s2018_s23, 2  ;;  %s192_s9 = int_to_ptr.vmem [resolvable:$true] %s191_s9 }
  0x12   : > { %p1579_p8 = pneg %p2126_p7  ;;  %s217_s13 = sshll.u32 %s2492_s3, 4  ;;  %s218_s13 = int_to_ptr.hbm [resolvable:$true] %s217_s13 }
  0x13   : > { %s2495_s14 = smov 128   ;;  %s2496_s15 = smov 8  }
  0x14   : > { %p2134_p9 = pnand %p1579_p8, %p2107_p1  ;;  %s2023_s16 = smov [#allocation8]  }
  0x15   : > { %s189_s6 = sshll.u32 %s2502_s1, 4  ;;  %s219_s17 = sshll.u32 %s2023_s16, 4  ;;  %s190_s6 = int_to_ptr.hbm [resolvable:$true] %s189_s6  ;;  %s220_s17 = int_to_ptr.vmem [resolvable:$true] %s219_s17 }
  0x16   : > { %1582 = dma.hbm_to_vmem [thread:$0]  (!%p2134_p9), %s190_s6, 512, %s192_s9, [#allocation6], %s2495_s14, %s2495_s14, %s2496_s15  }
  0x17   : > { %s2505_s2 = sld [smem:[#allocation17_spill]]  ;;  %s231_s9 = sshll.u32 %s2493_s4, 4  ;;  %s232_s9 = int_to_ptr.hbm [resolvable:$true] %s231_s9 }
  0x18   : > { %1588 = dma.hbm_to_vmem [thread:$0]  (!%p2134_p9), %s218_s13, 512, %s220_s17, [#allocation9], %s2495_s14, %s2495_s14, %s2496_s15  }
  0x19   : > { %s2024_s11 = smov [#allocation7]   ;;  %s2025_s16 = smov [#allocation10]  }
  0x1a   : > { %s205_s12 = sshll.u32 %s2024_s11, 4  ;;  %s233_s25 = sshll.u32 %s2025_s16, 4  ;;  %s206_s12 = int_to_ptr.vmem [resolvable:$true] %s205_s12  ;;  %s234_s25 = int_to_ptr.vmem [resolvable:$true] %s233_s25 }
  0x1b   : > { %1591 = dma.hbm_to_vmem [thread:$0]  (!%p2134_p9), %s232_s9, 512, %s234_s25, [#allocation9], %s2495_s14, %s2495_s14, %s2496_s15  }
  0x1c   : > { %p165_p11 = scmp.eq.s32.totalorder %s1478_s24, 1  ;;  %s35_s13 = sadd.s32 1, %s2014_s22 }
  0x1d   : > { %s203_s30 = sshll.u32 %s2505_s2, 4  ;;  %p37_p12 = scmp.ge.s32.totalorder %s35_s13, 2  ;;  %s204_s30 = int_to_ptr.hbm [resolvable:$true] %s203_s30 }
  0x1e   : > { %1585 = dma.hbm_to_vmem [thread:$0]  (!%p2134_p9), %s204_s30, 512, %s206_s12, [#allocation6], %s2495_s14, %s2495_s14, %s2496_s15  }
  0x1f   : > { %s42_s17 = sadd.s32 1, %s2006_s20  ;;  %p49_p13 = scmp.ne.s32.totalorder %s2006_s20, %s2002_s19 }
  0x20   : > { %p50_p0 = scmp.eq.s32.totalorder %s2018_s23, 0  ;;  %s2515_s13 = smov (%p37_p12, %s35_s13), 0 }
  0x21   : > { %p2177_p2 = por %p165_p11, %p49_p13  ;;  %p1604_p4 = scmp.lt.s32.totalorder %s2018_s23, 2 }
  0x22   : > { %s39_s10 = ssub.s32 %s2014_s22, %s2515_s13  ;;  %s247_s30 = sand.u32 1, %s2006_s20  }
  0x23   : > { %p40_p6 = scmp.eq.s32.totalorder %s39_s10, 0  ;;  %p51_p8 = por %p50_p0, %p49_p13 }
  0x24   : > { %s1486_s6 = sshll.u32 %s247_s30, 4  ;;  %s1557_s24 = sshll.u32 %s2014_s22, 4 }
  0x25   : > { %s2187_s8 = scalar_select %p40_p6, %s2006_s20, %s42_s17  }
  0x26   : > { %s256_s12 = scalar_lea.hbm %s2489_s0, %s1557_s24  ;;  %s251_s25 = scalar_lea.vmem [#allocation2], %s1486_s6 }
  0x27   : > { %s257_s16 = sshll.u32 %s256_s12, 4  ;;  %s259_s14 = sshll.u32 %s251_s25, 4  ;;  %s258_s16 = int_to_ptr.hbm [resolvable:$true] %s257_s16  ;;  %s260_s14 = int_to_ptr.vmem [resolvable:$true] %s259_s14 }
  0x28   : > { %p1593_p9 = pnand %p1604_p4, %p51_p8  ;;  %s248_s15 = scalar_lea.sflag [#allocation3], %s247_s30 }
  0x29   : > { %s2507_s1 = smov 8   ;;  %s2508_s2 = smov 128  }
  0x2a   : > { %1595 = dma.hbm_to_vmem [thread:$0]  (!%p1593_p9), %s258_s16, 256, %s260_s14, %s248_s15, %s2508_s2, %s2508_s2, %s2507_s1  }
  0x2b   : > { %271 = sbr.rel (%p2126_p7) target bundleno = 1075 (0x433), region = 40  ;;  %s2200_s17 = sand.u32 (!%p2126_p7), 1, %s2002_s19  }
  0x2c   : > { %s1490_s10 = sshll.u32 (!%p2126_p7), %s2200_s17, 4  ;;  %s274_s6 = scalar_lea.sflag (!%p2126_p7), [#allocation3], %s2200_s17 }
  0x2d   : > { %s2206_s24 = scalar_lea.vmem (!%p2126_p7), [#allocation2], %s1490_s10 }
  0x30   : > { %1981 = dma.done.wait (%p2113_p3), %s274_s6, 256  }
  0x31   : > { %1983 = vsyncadd (%p2113_p3), %s274_s6, 4294967040 }
  0x32   : > { %1985 = dma.done.wait (%p2107_p1), [#allocation6], 1024  }
  0x33   : > { %1987 = vsyncadd (%p2107_p1), [#allocation6], 4294966272 }
  0x34   : > { %1989 = dma.done.wait (%p2107_p1), [#allocation9], 1024  }
  0x35   : > { %1991 = vsyncadd (%p2107_p1), [#allocation9], 4294966272  ;;  %v331_v0 = vld [vmem:[#allocation5 + $0x18] sm:$0xff]  ;;  %v330_v2 = vld [vmem:[#allocation5 + $0x10] sm:$0xff]  ;;  %vm332_vm0 = vcmask 261120   ;;  %s2026_s1 = smov 124  }
  0x36   : > { %v365_v1 = vld [vmem:[#allocation7 + $0x18] sm:$0xff]  ;;  %351 = vmatpush.msra.mxu0 %v331_v0  ;;  %v364_v3 = vld [vmem:[#allocation7 + $0x10] sm:$0xff]  ;;  %v329_v4 = vld [vmem:[#allocation5 + $0x8] sm:$0xff]  ;;  %s2027_s2 = smov 120   ;;  %vm418_vm1 = vcmask 31744   ;;  %s2028_s26 = smov 116  }
  0x37   : > { %378 = vmatpush.msra.mxu1 %v365_v1  ;;  %v363_v5 = vld [vmem:[#allocation7 + $0x8] sm:$0xff]  ;;  %v392_v6 = vld [vmem:[#allocation8 + $0x18] sm:$0xff]  ;;  %v391_v7 = vld [vmem:[#allocation8 + $0x10] sm:$0xff]  ;;  %s2029_s27 = smov 108   ;;  %s2030_s7 = smov 112   ;;  %vm454_vm2 = vcmask 130048  }
  0x38   : > { %352 = vmatpush.msra.mxu0 %v330_v2  ;;  %v328_v8 = vld [vmem:[#allocation5] sm:$0xff]  ;;  %405 = vmatpush.msra.mxu2 %v392_v6  ;;  %v390_v11 = vld [vmem:[#allocation8 + $0x8] sm:$0xff]  ;;  %s2031_s14 = smov 100   ;;  %s2032_s15 = smov 104   ;;  %vm1286_vm3 = vcmask 64512   ;;  %vm1289_vm4 = vcmask 97280  }
  0x39   : > { %379 = vmatpush.msra.mxu1 %v364_v3  ;;  %v362_v9 = vld [vmem:[#allocation7] sm:$0xff]  ;;  %v327_v13 = vld [vmem:[%s2206_s24 + $0x8] sm:$0xff]  ;;  %s2033_s30 = smov 4   ;;  %s2034_s9 = smov 12   ;;  %vm1294_vm5 = vcmask 162816   ;;  %vm1297_vm6 = vcmask 195584  }
  0x3a   : > { %353 = vmatpush.msra.mxu0 %v329_v4  ;;  %v326_v10 = vld [vmem:[%s2206_s24] sm:$0xff]  ;;  %406 = vmatpush.msra.mxu2 %v391_v7  ;;  %s2035_s11 = smov 8   ;;  %s2036_s12 = smov 16   ;;  %vm1300_vm7 = vcmask 228352  }
  0x3b   : > { %380 = vmatpush.msra.mxu1 %v363_v5  ;;  %v389_v12 = vld [vmem:[#allocation8] sm:$0xff]  ;;  %s2037_s16 = smov 20   ;;  %s2038_s25 = smov 28  }
  0x3c   : > { %354 = vmatpush.msra.mxu0 %v328_v8  ;;  %407 = vmatpush.msra.mxu2 %v390_v11  ;;  %s2039_s6 = smov 24   ;;  %s1558_s24 = sshll.u32 %s2010_s21, 4 }
  0x3d   : > { %381 = vmatpush.msra.mxu1 %v362_v9  ;;  %1496 = vmatmul.msk.f32.vlgmr.msra.gmra.mxu0 %vm332_vm0, %v326_v10 }
  0x3e   : > { %1498 = vmatmul.msk.f32.vlgmr.msra.gmra.mxu1 %vm332_vm0, %v326_v10  ;;  %408 = vmatpush.msra.mxu2 %v389_v12 }
  0x3f   : > { %1500 = vmatmul.msk.f32.vlgmr.msra.gmra.mxu2 %vm332_vm0, %v326_v10 }
  0x45   : > { %1497 = vmatmul.msk.f32.gmra.mxu0 %vm332_vm0, %v327_v13 }
  0x46   : > { %1499 = vmatmul.msk.f32.gmra.mxu1 %vm332_vm0, %v327_v13 }
  0x47   : > { %1501 = vmatmul.msk.f32.gmra.mxu2 %vm332_vm0, %v327_v13 }
  0xba   : > { %v356_v14 = vpop.f32.mrf.mxu0 }
  0xbb   : > { %v383_v15 = vpop.f32.mrf.mxu1  ;;  %v416_v16 = vmul.f32 0.5, %v356_v14 }
  0xbc   : > { %516 = vrot.lane.b32.xlu0 %v383_v15, %s2026_s1 }
  0xbd   : > { %616 = vrot.lane.b32.xlu2 %v416_v16, %s2027_s2  ;;  %512 = vrot.lane.b32.xlu1 %v416_v16, %s2026_s1 }
  0xc2   : > { %v359_v18 = vpop.f32.mrf.mxu0  ;;  %v410_v20 = vpop.f32.mrf.mxu2 }
  0xc3   : > { %v386_v17 = vpop.f32.mrf.mxu1  ;;  %v417_v19 = vmul.f32 0.5, %v359_v18 }
  0xc4   : > { %518 = vrot.lane.b32.xlu0 %v386_v17, %s2026_s1  ;;  %1502 = vmatpush.xpose.msk.msra.mxu3 %vm418_vm1, %v386_v17 }
  0xc5   : > { %622 = vrot.lane.b32.xlu2 %v386_v17, %s2027_s2  ;;  %722 = vrot.lane.b32.xlu1 %v383_v15, %s2028_s26 }
  0xc8   : > { %1503 = vmatpush.xpose.msk.msra.mxu3 %vm418_vm1, %v383_v15 }
  0xca   : > { %v413_v21 = vpop.f32.mrf.mxu2 }
  0xcb   : > { %1504 = vmatmul.msk.f32.vlgmr.msra.gmra.mxu3 %vm418_vm1, %v416_v16  ;;  %v2259_v22 = vpack.i.bf16 %v410_v20, %v413_v21  ;;  %501 = vmatpush.msrb.mxu0 %v413_v21 }
  0xcc   : > { %620 = vrot.lane.b32.xlu0 %v383_v15, %s2027_s2 }
  0xcd   : > { %724 = vrot.lane.b32.xlu2 %v386_v17, %s2028_s26  ;;  %928 = vrot.lane.b32.xlu1 %v386_v17, %s2029_s27 }
  0xce   : > { %502 = vmatpush.msrb.mxu0 %v410_v20 }
  0xd3   : > { %1505 = vmatmul.msk.f32.gmra.mxu3 %vm418_vm1, %v417_v19 }
  0xd4   : > { %718 = vrot.lane.b32.xlu0 %v416_v16, %s2028_s26 }
  0xd5   : > { %824 = vrot.lane.b32.xlu2 %v383_v15, %s2030_s7  ;;  %514 = vrot.lane.b32.xlu1 %v417_v19, %s2026_s1 }
  0xdc   : > { %926 = vrot.lane.b32.xlu0 %v383_v15, %s2029_s27 }
  0xdd   : > { %720 = vrot.lane.b32.xlu2 %v417_v19, %s2028_s26  ;;  %618 = vrot.lane.b32.xlu1 %v417_v19, %s2027_s2 }
  0xe4   : > { %826 = vrot.lane.b32.xlu0 %v386_v17, %s2030_s7 }
  0xe5   : > { %922 = vrot.lane.b32.xlu2 %v416_v16, %s2029_s27  ;;  %820 = vrot.lane.b32.xlu1 %v416_v16, %s2030_s7 }
  0xec   : > { %1132 = vrot.lane.b32.xlu0 %v386_v17, %s2031_s14 }
  0xed   : > { %1030 = vrot.lane.b32.xlu2 %v386_v17, %s2032_s15  ;;  %1028 = vrot.lane.b32.xlu1 %v383_v15, %s2032_s15 }
  0xf4   : > { %822 = vrot.lane.b32.xlu0 %v417_v19, %s2030_s7 }
  0xf5   : > { %1130 = vrot.lane.b32.xlu2 %v383_v15, %s2031_s14  ;;  %924 = vrot.lane.b32.xlu1 %v417_v19, %s2029_s27 }
  0xfc   : > { %1024 = vrot.lane.b32.xlu0 %v416_v16, %s2032_s15 }
  0xfd   : > { %1026 = vrot.lane.b32.xlu2 %v417_v19, %s2032_s15  ;;  %1126 = vrot.lane.b32.xlu1 %v416_v16, %s2031_s14 }
 0x104   : > { %1128 = vrot.lane.b32.xlu0 %v417_v19, %s2031_s14 }
 0x105   : > { %1680 = vrot.lane.b32.xlu2 %v2259_v22, %s2026_s1  ;;  %s324_s1 = scalar_lea.vmem [#allocation11], %s1490_s10 }
 0x10c   : > { %1690 = vrot.lane.b32.xlu0 %v2259_v22, %s2027_s2 }
 0x117   : > { %v617_v23 = vpop.permute.xlu2 %616 }
 0x11f   : > { %v623_v24 = vpop.permute.xlu2 %622 }
 0x120   : > { %1514 = vmatpush.xpose.msk.msrb.mxu3 %vm418_vm1, %v623_v24 }
 0x127   : > { %v725_v26 = vpop.permute.xlu2 %724 }
 0x12e   : > { %v517_v25 = vpop.permute.xlu0 %516 }
 0x12f   : > { %v513_v27 = vpop.permute.xlu1 %512  ;;  %v825_v30 = vpop.permute.xlu2 %824 }
 0x136   : > { %v519_v28 = vpop.permute.xlu0 %518 }
 0x137   : > { %1508 = vmatpush.xpose.msk.msrb.mxu1 %vm418_vm1, %v519_v28  ;;  %v723_v29 = vpop.permute.xlu1 %722  ;;  %v721_v33 = vpop.permute.xlu2 %720 }
 0x13b   : > { %1509 = vmatpush.xpose.msk.msrb.mxu1 %vm418_vm1, %v517_v25 }
 0x13e   : > { %v621_v31 = vpop.permute.xlu0 %620  ;;  %1510 = vmatmul.msk.f32.vlgmr.msrb.gmra.mxu1 %vm418_vm1, %v513_v27 }
 0x13f   : > { %1520 = vmatpush.xpose.msk.msra.mxu1 %vm418_vm1, %v725_v26  ;;  %1515 = vmatpush.xpose.msk.msrb.mxu3 %vm418_vm1, %v621_v31  ;;  %v929_v32 = vpop.permute.xlu1 %928  ;;  %v923_v36 = vpop.permute.xlu2 %922 }
 0x142   : > { %1516 = vmatmul.msk.f32.vlgmr.msrb.gmra.mxu3 %vm418_vm1, %v617_v23 }
 0x143   : > { %1521 = vmatpush.xpose.msk.msra.mxu1 %vm418_vm1, %v723_v29 }
 0x146   : > { %v719_v34 = vpop.permute.xlu0 %718 }
 0x147   : > { %1532 = vmatpush.xpose.msk.msrb.mxu1 %vm418_vm1, %v929_v32  ;;  %v515_v35 = vpop.permute.xlu1 %514  ;;  %v1031_v44 = vpop.permute.xlu2 %1030 }
 0x148   : > { %1511 = vmatmul.msk.f32.gmra.mxu1 %vm418_vm1, %v515_v35 }
 0x14e   : > { %v927_v37 = vpop.permute.xlu0 %926  ;;  %v448_v38 = vpop.f32.mrf.mxu3 }
 0x14f   : > { %1533 = vmatpush.xpose.msk.msrb.mxu1 %vm418_vm1, %v927_v37  ;;  %v455_v39 = vsel %vm454_vm2, %v448_v38, -inf  ;;  %v619_v40 = vpop.permute.xlu1 %618  ;;  %v1131_v48 = vpop.permute.xlu2 %1130 }
 0x150   : > { %456 = vmax.xlane.f32.xlu2 %v455_v39  ;;  %1517 = vmatmul.msk.f32.gmra.mxu3 %vm418_vm1, %v619_v40 }
 0x151   : > { %1522 = vmatmul.msk.f32.vlgmr.msra.gmra.mxu1 %vm418_vm1, %v719_v34 }
 0x156   : > { %v827_v41 = vpop.permute.xlu0 %826  ;;  %v451_v42 = vpop.f32.mrf.mxu3 }
 0x157   : > { %1526 = vmatpush.xpose.msk.msra.mxu3 %vm418_vm1, %v827_v41  ;;  %v458_v43 = vsel %vm454_vm2, %v451_v42, -inf  ;;  %v821_v45 = vpop.permute.xlu1 %820  ;;  %v1027_v53 = vpop.permute.xlu2 %1026 }
 0x158   : > { %459 = vmax.xlane.f32.xlu1 %v458_v43 }
 0x159   : > { %1523 = vmatmul.msk.f32.gmra.mxu1 %vm418_vm1, %v721_v33 }
 0x15b   : > { %1527 = vmatpush.xpose.msk.msra.mxu3 %vm418_vm1, %v825_v30 }
 0x15e   : > { %v1133_v46 = vpop.permute.xlu0 %1132  ;;  %1528 = vmatmul.msk.f32.vlgmr.msra.gmra.mxu3 %vm418_vm1, %v821_v45 }
 0x15f   : > { %1538 = vmatpush.xpose.msk.msrb.mxu3 %vm418_vm1, %v1031_v44  ;;  %1544 = vmatpush.xpose.msk.msra.mxu1 %vm418_vm1, %v1133_v46  ;;  %v1029_v47 = vpop.permute.xlu1 %1028  ;;  %v1681_v55 = vpop.permute.xlu2 %1680 }
 0x160   : > { %v1682_v11 = vunpack.i.l.bf16 %v1681_v55  ;;  %v1683_v14 = vunpack.i.h.bf16 %v1681_v55 }
 0x161   : > { %1534 = vmatmul.msk.f32.vlgmr.msrb.gmra.mxu1 %vm418_vm1, %v923_v36 }
 0x162   : > { %605 = vmatpush.msrb.mxu2 %v1682_v11 }
 0x163   : > { %1539 = vmatpush.xpose.msk.msrb.mxu3 %vm418_vm1, %v1029_v47  ;;  %1545 = vmatpush.xpose.msk.msra.mxu1 %vm418_vm1, %v1131_v48 }
 0x164   : > { %606 = vmatpush.msrb.mxu2 %v1683_v14 }
 0x166   : > { %v823_v49 = vpop.permute.xlu0 %822 }
 0x167   : > { %1529 = vmatmul.msk.f32.gmra.mxu3 %vm418_vm1, %v823_v49  ;;  %v925_v50 = vpop.permute.xlu1 %924 }
 0x169   : > { %1535 = vmatmul.msk.f32.gmra.mxu1 %vm418_vm1, %v925_v50 }
 0x16e   : > { %v1025_v51 = vpop.permute.xlu0 %1024 }
 0x16f   : > { %1540 = vmatmul.msk.f32.vlgmr.msrb.gmra.mxu3 %vm418_vm1, %v1025_v51  ;;  %v1127_v52 = vpop.permute.xlu1 %1126 }
 0x171   : > { %1546 = vmatmul.msk.f32.vlgmr.msra.gmra.mxu1 %vm418_vm1, %v1127_v52 }
 0x176   : > { %v1129_v54 = vpop.permute.xlu0 %1128 }
 0x177   : > { %1541 = vmatmul.msk.f32.gmra.mxu3 %vm418_vm1, %v1027_v53 }
 0x179   : > { %1547 = vmatmul.msk.f32.gmra.mxu1 %vm418_vm1, %v1129_v54 }
 0x17e   : > { %v1691_v18 = vpop.permute.xlu0 %1690 }
 0x17f   : > { %v1693_v19 = vunpack.i.h.bf16 %v1691_v18  ;;  %v1692_v20 = vunpack.i.l.bf16 %v1691_v18 }
 0x181   : > { %707 = vmatpush.msra.mxu0 %v1692_v20 }
 0x183   : > { %708 = vmatpush.msra.mxu0 %v1693_v19 }
 0x1bb   : > { %v2296_v56 = vpop.f32.mrf.mxu1 }
 0x1bc   : > { %v551_v57 = vsel %vm454_vm2, %v2296_v56, -inf }
 0x1bd   : > { %552 = vmax.xlane.f32.xlu1 %v551_v57 }
 0x1c3   : > { %v457_v58 = vpop.xlane.xlu2 %456 }
 0x1c4   : > { %v461_v59 = vsub.f32 %v448_v38, %v457_v58 }
 0x1c5   : > { %v2300_v61 = vpop.f32.mrf.mxu1  ;;  %v2304_v0 = vpop.f32.mrf.mxu3 }
 0x1c6   : > { %v463_v60 = vmul.f32 1.442695, %v461_v59  ;;  %v554_v62 = vsel %vm454_vm2, %v2300_v61, -inf  ;;  %v655_v21 = vsel %vm454_vm2, %v2304_v0, -inf }
 0x1c7   : > { %555 = vmax.xlane.f32.xlu0 %v554_v62 }
 0x1c8   : > { %1714 = vpow2.f32 %v463_v60 }
 0x1cb   : > { %v460_v63 = vpop.xlane.xlu1 %459 }
 0x1cc   : > { %v462_v1 = vsub.f32 %v451_v42, %v460_v63 }
 0x1ce   : > { %v1715_v2 = vpop.eup %1714  ;;  %v465_v3 = vmul.f32 1.442695, %v462_v1  ;;  %v2306_v4 = vpop.f32.mrf.mxu1 }
 0x1cf   : > { %1506 = vmatmul.msk.f32.vlgmr.msrb.gmra.mxu0 %vm454_vm2, %v1715_v2  ;;  %v757_v5 = vsel %vm454_vm2, %v2306_v4, -inf  ;;  %v467_v33 = vsel %vm454_vm2, %v1715_v2, 0.0 }
 0x1d0   : > { %1716 = vpow2.f32 %v465_v3  ;;  %758 = vmax.xlane.f32.xlu0 %v757_v5 }
 0x1d3   : > { %v2311_v6 = vpop.f32.mrf.mxu3 }
 0x1d4   : > { %v658_v7 = vsel %vm454_vm2, %v2311_v6, -inf }
 0x1d5   : > { %659 = vmax.xlane.f32.xlu2 %v658_v7 }
 0x1d6   : > { %v1717_v8 = vpop.eup %1716  ;;  %v2315_v9 = vpop.f32.mrf.mxu1  ;;  %1685 = vrot.lane.b32.xlu1 %v2259_v22, %s2028_s26 }
 0x1d7   : > { %1507 = vmatmul.msk.f32.gmra.mxu0 %vm454_vm2, %v1717_v8  ;;  %v760_v17 = vsel %vm454_vm2, %v2315_v9, -inf  ;;  %v470_v37 = vsel %vm454_vm2, %v1717_v8, 0.0 }
 0x1de   : > { %v2320_v10 = vpop.f32.mrf.mxu1 }
 0x1df   : > { %v961_v23 = vsel %vm454_vm2, %v2320_v10, -inf }
 0x1e1   : > { %v2322_v12 = vpop.f32.mrf.mxu3 }
 0x1e2   : > { %v859_v13 = vsel %vm454_vm2, %v2322_v12, -inf }
 0x1e3   : > { %860 = vmax.xlane.f32.xlu0 %v859_v13 }
 0x1e6   : > { %v2326_v15 = vpop.f32.mrf.mxu1 }
 0x1e7   : > { %v964_v16 = vsel %vm454_vm2, %v2326_v15, -inf }
 0x1e8   : > { %965 = vmax.xlane.f32.xlu2 %v964_v16 }
 0x1ea   : > { %v2342_v24 = vpop.f32.mrf.mxu3 }
 0x1eb   : > { %761 = vmax.xlane.f32.xlu0 %v760_v17  ;;  %v862_v25 = vsel %vm454_vm2, %v2342_v24, -inf }
 0x1ee   : > { %v2348_v26 = vpop.f32.mrf.mxu1 }
 0x1ef   : > { %v1165_v27 = vsel %vm454_vm2, %v2348_v26, -inf }
 0x1f2   : > { %v2352_v28 = vpop.f32.mrf.mxu3 }
 0x1f3   : > { %v1063_v32 = vsel %vm454_vm2, %v2352_v28, -inf }
 0x1f6   : > { %v2354_v29 = vpop.f32.mrf.mxu1 }
 0x1f7   : > { %v1168_v30 = vsel %vm454_vm2, %v2354_v29, -inf }
 0x1fa   : > { %v2358_v31 = vpop.f32.mrf.mxu3 }
 0x1ff   : > { %1700 = vrot.lane.b32.xlu0 %v2259_v22, %s2030_s7  ;;  %s1353_s7 = sshll.u32 %s324_s1, 4  ;;  %s1354_s7 = int_to_ptr.vmem [resolvable:$true] %s1353_s7 }
 0x200   : > { %1695 = vrot.lane.b32.xlu2 %v2259_v22, %s2029_s27  ;;  %656 = vmax.xlane.f32.xlu1 %v655_v21  ;;  %s1352_s27 = scalar_lea.hbm %s2494_s5, %s1558_s24 }
 0x207   : > { %1705 = vrot.lane.b32.xlu0 %v2259_v22, %s2031_s14  ;;  %s1355_s14 = sshll.u32 %s1352_s27, 4  ;;  %s1356_s14 = int_to_ptr.hbm [resolvable:$true] %s1355_s14 }
 0x208   : > { %962 = vmax.xlane.f32.xlu1 %v961_v23 }
 0x20f   : > { %1710 = vrot.lane.b32.xlu0 %v2259_v22, %s2032_s15  ;;  %v1066_v22 = vsel %vm454_vm2, %v2358_v31, -inf  ;;  %s1339_s15 = scalar_lea.sflag [#allocation4], %s2200_s17 }
 0x210   : > { %863 = vmax.xlane.f32.xlu1 %v862_v25 }
 0x218   : > { %1166 = vmax.xlane.f32.xlu1 %v1165_v27 }
 0x220   : > { %1169 = vmax.xlane.f32.xlu1 %v1168_v30 }
 0x228   : > { %1067 = vmax.xlane.f32.xlu1 %v1066_v22 }
 0x229   : > { %1064 = vmax.xlane.f32.xlu2 %v1063_v32 }
 0x230   : > { %468 = vadd.xlane.f32.xlu1 %v467_v33  ;;  %v553_v34 = vpop.xlane.xlu1 %552 }
 0x231   : > { %v557_v35 = vsub.f32 %v2296_v56, %v553_v34 }
 0x233   : > { %v559_v36 = vmul.f32 1.442695, %v557_v35 }
 0x235   : > { %1718 = vpow2.f32 %v559_v36 }
 0x239   : > { %471 = vadd.xlane.f32.xlu0 %v470_v37 }
 0x23a   : > { %v556_v39 = vpop.xlane.xlu0 %555 }
 0x23b   : > { %v1719_v38 = vpop.eup %1718  ;;  %v558_v40 = vsub.f32 %v2300_v61, %v556_v39 }
 0x23c   : > { %1512 = vmatmul.msk.f32.vlgmr.msrb.gmra.mxu2 %vm454_vm2, %v1719_v38  ;;  %v563_v41 = vsel %vm454_vm2, %v1719_v38, 0.0 }
 0x23d   : > { %564 = vadd.xlane.f32.xlu1 %v563_v41  ;;  %v561_v42 = vmul.f32 1.442695, %v558_v40 }
 0x23f   : > { %1720 = vpow2.f32 %v561_v42 }
 0x243   : > { %v759_v43 = vpop.xlane.xlu0 %758 }
 0x244   : > { %v763_v44 = vsub.f32 %v2306_v4, %v759_v43 }
 0x245   : > { %v1721_v45 = vpop.eup %1720 }
 0x246   : > { %v765_v46 = vmul.f32 1.442695, %v763_v44  ;;  %1513 = vmatmul.msk.f32.gmra.mxu2 %vm454_vm2, %v1721_v45  ;;  %v566_v47 = vsel %vm454_vm2, %v1721_v45, 0.0 }
 0x247   : > { %567 = vadd.xlane.f32.xlu1 %v566_v47 }
 0x248   : > { %1722 = vpow2.f32 %v765_v46  ;;  %v1686_v48 = vpop.permute.xlu1 %1685  ;;  %v660_v50 = vpop.xlane.xlu2 %659 }
 0x249   : > { %v1687_v49 = vunpack.i.l.bf16 %v1686_v48  ;;  %v662_v51 = vsub.f32 %v2311_v6, %v660_v50  ;;  %v1688_v52 = vunpack.i.h.bf16 %v1686_v48 }
 0x24b   : > { %809 = vmatpush.msra.mxu2 %v1687_v49  ;;  %v665_v53 = vmul.f32 1.442695, %v662_v51 }
 0x24d   : > { %810 = vmatpush.msra.mxu2 %v1688_v52  ;;  %1724 = vpow2.f32 %v665_v53 }
 0x24e   : > { %v1723_v54 = vpop.eup %1722 }
 0x24f   : > { %1524 = vmatmul.msk.f32.vlgmr.msra.gmra.mxu2 %vm454_vm2, %v1723_v54  ;;  %v769_v55 = vsel %vm454_vm2, %v1723_v54, 0.0 }
 0x250   : > { %770 = vadd.xlane.f32.xlu1 %v769_v55 }
 0x253   : > { %v1725_v56 = vpop.eup %1724 }
 0x254   : > { %v670_v57 = vsel %vm454_vm2, %v1725_v56, 0.0 }
 0x255   : > { %671 = vadd.xlane.f32.xlu2 %v670_v57 }
 0x256   : > { %v861_v58 = vpop.xlane.xlu0 %860 }
 0x257   : > { %v865_v59 = vsub.f32 %v2322_v12, %v861_v58 }
 0x259   : > { %v867_v60 = vmul.f32 1.442695, %v865_v59 }
 0x25b   : > { %1726 = vpow2.f32 %v867_v60  ;;  %v966_v61 = vpop.xlane.xlu2 %965 }
 0x25c   : > { %v968_v27 = vsub.f32 %v2326_v15, %v966_v61 }
 0x25e   : > { %v762_v62 = vpop.xlane.xlu0 %761  ;;  %v971_v32 = vmul.f32 1.442695, %v968_v27 }
 0x25f   : > { %v764_v63 = vsub.f32 %v2315_v9, %v762_v62 }
 0x261   : > { %v1727_v1 = vpop.eup %1726  ;;  %v767_v2 = vmul.f32 1.442695, %v764_v63 }
 0x262   : > { %v871_v3 = vsel %vm454_vm2, %v1727_v1, 0.0 }
 0x263   : > { %1728 = vpow2.f32 %v767_v2  ;;  %v1696_v4 = vpop.permute.xlu2 %1695  ;;  %872 = vadd.xlane.f32.xlu1 %v871_v3 }
 0x264   : > { %v1697_v5 = vunpack.i.l.bf16 %v1696_v4  ;;  %v1698_v6 = vunpack.i.h.bf16 %v1696_v4 }
 0x266   : > { %1013 = vmatpush.msrb.mxu2 %v1697_v5 }
 0x268   : > { %1014 = vmatpush.msrb.mxu2 %v1698_v6 }
 0x269   : > { %v1729_v7 = vpop.eup %1728 }
 0x26a   : > { %1525 = vmatmul.msk.f32.gmra.mxu2 %vm454_vm2, %v1729_v7  ;;  %v772_v8 = vsel %vm454_vm2, %v1729_v7, 0.0 }
 0x26b   : > { %773 = vadd.xlane.f32.xlu1 %v772_v8 }
 0x271   : > { %v1701_v11 = vpop.permute.xlu0 %1700 }
 0x272   : > { %v1702_v12 = vunpack.i.l.bf16 %v1701_v11  ;;  %v1703_v13 = vunpack.i.h.bf16 %v1701_v11 }
 0x273   : > { %v657_v9 = vpop.xlane.xlu1 %656 }
 0x274   : > { %v661_v14 = vsub.f32 %v2304_v0, %v657_v9  ;;  %911 = vmatpush.msrb.mxu0 %v1702_v12 }
 0x276   : > { %v663_v16 = vmul.f32 1.442695, %v661_v14  ;;  %912 = vmatpush.msrb.mxu0 %v1703_v13 }
 0x278   : > { %1730 = vpow2.f32 %v663_v16 }
 0x279   : > { %v1706_v17 = vpop.permute.xlu0 %1705 }
 0x27a   : > { %v1707_v18 = vunpack.i.l.bf16 %v1706_v17  ;;  %v1708_v20 = vunpack.i.h.bf16 %v1706_v17  ;;  %v2411_v17 = vpop.f32.mrf.mxu0 }
 0x27b   : > { %v963_v19 = vpop.xlane.xlu1 %962 }
 0x27c   : > { %v967_v21 = vsub.f32 %v2320_v10, %v963_v19  ;;  %1217 = vmatpush.msra.mxu2 %v1707_v18 }
 0x27e   : > { %v1731_v23 = vpop.eup %1730  ;;  %v969_v25 = vmul.f32 1.442695, %v967_v21  ;;  %1218 = vmatpush.msra.mxu2 %v1708_v20 }
 0x27f   : > { %1518 = vmatmul.msk.f32.vlgmr.msra.gmra.mxu0 %vm454_vm2, %v1731_v23  ;;  %v667_v0 = vsel %vm454_vm2, %v1731_v23, 0.0 }
 0x280   : > { %1732 = vpow2.f32 %v969_v25  ;;  %668 = vadd.xlane.f32.xlu0 %v667_v0 }
 0x281   : > { %v1711_v30 = vpop.permute.xlu0 %1710  ;;  %1734 = vpow2.f32 %v971_v32 }
 0x282   : > { %v1712_v22 = vunpack.i.l.bf16 %v1711_v30  ;;  %v1713_v34 = vunpack.i.h.bf16 %v1711_v30  ;;  %v2415_v21 = vpop.f32.mrf.mxu0 }
 0x283   : > { %v864_v33 = vpop.xlane.xlu1 %863 }
 0x284   : > { %v866_v35 = vsub.f32 %v2342_v24, %v864_v33  ;;  %1115 = vmatpush.msra.mxu0 %v1712_v22 }
 0x286   : > { %v1733_v10 = vpop.eup %1732  ;;  %v869_v36 = vmul.f32 1.442695, %v866_v35  ;;  %1116 = vmatpush.msra.mxu0 %v1713_v34 }
 0x287   : > { %1519 = vmatmul.msk.f32.gmra.mxu0 %vm454_vm2, %v1725_v56  ;;  %1536 = vmatmul.msk.f32.vlgmr.msrb.gmra.mxu2 %vm454_vm2, %v1733_v10  ;;  %v1735_v38 = vpop.eup %1734 }
 0x288   : > { %1736 = vpow2.f32 %v869_v36  ;;  %v976_v57 = vsel %vm454_vm2, %v1735_v38, 0.0 }
 0x28b   : > { %v1167_v15 = vpop.xlane.xlu1 %1166 }
 0x28c   : > { %v1171_v37 = vsub.f32 %v2348_v26, %v1167_v15  ;;  %v973_v26 = vsel %vm454_vm2, %v1733_v10, 0.0 }
 0x28e   : > { %v1737_v39 = vpop.eup %1736  ;;  %v1173_v40 = vmul.f32 1.442695, %v1171_v37 }
 0x28f   : > { %1530 = vmatmul.msk.f32.vlgmr.msrb.gmra.mxu0 %vm454_vm2, %v1727_v1  ;;  %1537 = vmatmul.msk.f32.gmra.mxu2 %vm454_vm2, %v1735_v38  ;;  %v874_v24 = vsel %vm454_vm2, %v1737_v39, 0.0 }
 0x290   : > { %1738 = vpow2.f32 %v1173_v40  ;;  %875 = vadd.xlane.f32.xlu2 %v874_v24 }
 0x293   : > { %v1170_v41 = vpop.xlane.xlu1 %1169 }
 0x294   : > { %v1172_v42 = vsub.f32 %v2354_v29, %v1170_v41 }
 0x296   : > { %v1739_v43 = vpop.eup %1738  ;;  %v1175_v44 = vmul.f32 1.442695, %v1172_v42 }
 0x297   : > { %1531 = vmatmul.msk.f32.gmra.mxu0 %vm454_vm2, %v1737_v39  ;;  %1548 = vmatmul.msk.f32.vlgmr.msra.gmra.mxu2 %vm454_vm2, %v1739_v43  ;;  %v1177_v29 = vsel %vm454_vm2, %v1739_v43, 0.0 }
 0x298   : > { %1740 = vpow2.f32 %v1175_v44  ;;  %974 = vadd.xlane.f32.xlu2 %v973_v26 }
 0x29b   : > { %v1068_v45 = vpop.xlane.xlu1 %1067 }
 0x29c   : > { %v1070_v46 = vsub.f32 %v2358_v31, %v1068_v45  ;;  %v1065_v47 = vpop.xlane.xlu2 %1064 }
 0x29d   : > { %v1069_v48 = vsub.f32 %v2352_v28, %v1065_v47 }
 0x29e   : > { %v1741_v49 = vpop.eup %1740  ;;  %v1073_v50 = vmul.f32 1.442695, %v1070_v46 }
 0x29f   : > { %v1071_v51 = vmul.f32 1.442695, %v1069_v48  ;;  %1549 = vmatmul.msk.f32.gmra.mxu2 %vm454_vm2, %v1741_v49  ;;  %v1180_v54 = vsel %vm454_vm2, %v1741_v49, 0.0 }
 0x2a0   : > { %1742 = vpow2.f32 %v1073_v50  ;;  %1178 = vadd.xlane.f32.xlu2 %v1177_v29 }
 0x2a1   : > { %1744 = vpow2.f32 %v1071_v51 }
 0x2a3   : > { %v2404_v31 = vpop.xlane.xlu1 %468 }
 0x2a6   : > { %v1743_v52 = vpop.eup %1742 }
 0x2a7   : > { %v1745_v53 = vpop.eup %1744  ;;  %v1078_v55 = vsel %vm454_vm2, %v1743_v52, 0.0 }
 0x2a8   : > { %1542 = vmatmul.msk.f32.vlgmr.msra.gmra.mxu0 %vm454_vm2, %v1745_v53  ;;  %1181 = vadd.xlane.f32.xlu2 %v1180_v54  ;;  %v1075_v28 = vsel %vm454_vm2, %v1745_v53, 0.0 }
 0x2a9   : > { %1079 = vadd.xlane.f32.xlu0 %v1078_v55  ;;  %1076 = vadd.xlane.f32.xlu1 %v1075_v28 }
 0x2ac   : > { %v2413_v18 = vpop.xlane.xlu0 %471 }
 0x2b0   : > { %1543 = vmatmul.msk.f32.gmra.mxu0 %vm454_vm2, %v1743_v52  ;;  %v565_v56 = vpop.xlane.xlu1 %564 }
 0x2b1   : > { %1746 = vrcp.f32 %v565_v56  ;;  %977 = vadd.xlane.f32.xlu1 %v976_v57 }
 0x2b7   : > { %v1747_v58 = vpop.eup %1746 }
 0x2b8   : > { %v571_v59 = vmul.f32 %v1747_v58, %v565_v56 }
 0x2ba   : > { %v573_v60 = vsub.f32 2.0, %v571_v59  ;;  %v568_v61 = vpop.xlane.xlu1 %567 }
 0x2bb   : > { %1748 = vrcp.f32 %v568_v61 }
 0x2bc   : > { %v575_v62 = vmul.f32 %v1747_v58, %v573_v60 }
 0x2bf   : > { %v608_v63 = vpop.f32.mrf.mxu2 }
 0x2c0   : > { %v614_v1 = vmul.f32 %v608_v63, %v575_v62 }
 0x2c1   : > { %v1749_v2 = vpop.eup %1748 }
 0x2c2   : > { %1230 = vrot.lane.b32.xlu2 %v614_v1, %s2033_s30  ;;  %v572_v3 = vmul.f32 %v1749_v2, %v568_v61 }
 0x2c3   : > { %v771_v4 = vpop.xlane.xlu1 %770 }
 0x2c4   : > { %1750 = vrcp.f32 %v771_v4  ;;  %v574_v5 = vsub.f32 2.0, %v572_v3 }
 0x2c6   : > { %v576_v6 = vmul.f32 %v1749_v2, %v574_v5 }
 0x2c8   : > { %v672_v19 = vpop.xlane.xlu2 %671 }
 0x2c9   : > { %v611_v8 = vpop.f32.mrf.mxu2 }
 0x2ca   : > { %v1751_v7 = vpop.eup %1750  ;;  %v615_v12 = vmul.f32 %v611_v8, %v576_v6 }
 0x2cb   : > { %v777_v11 = vmul.f32 %v1751_v7, %v771_v4 }
 0x2cc   : > { %1232 = vrot.lane.b32.xlu2 %v615_v12, %s2033_s30  ;;  %s1942_s30 = sshra.s32 %s1356_s14, 4  ;;  %s1943_s30 = int_to_ptr.hbm [resolvable:$true] %s1942_s30 }
 0x2cd   : > { %v779_v9 = vsub.f32 2.0, %v777_v11  ;;  %s1944_s21 = scalar_lea.hbm %s1943_s30, 16  ;;  %p1949_p11 = scmp.lt.s32.totalorder %s1943_s30, %s2494_s5 }
 0x2ce   : > { %p1945_p1 = scmp.ne.s32.totalorder %s1943_s30, %s1944_s21 }
 0x2cf   : > { %v781_v13 = vmul.f32 %v1751_v7, %v779_v9 }
 0x2d0   : > { %p1946_p3 = pnand %p1945_p1, %p2177_p2 }
 0x2d2   : > { %v812_v14 = vpop.f32.mrf.mxu2  ;;  %p1947_p7 = pneg %p1946_p3 }
 0x2d3   : > { %v818_v16 = vmul.f32 %v812_v14, %v781_v13 }
 0x2d5   : > { %1246 = vrot.lane.b32.xlu0 %v818_v16, %s2034_s9 }
 0x2d6   : > { %v873_v23 = vpop.xlane.xlu1 %872 }
 0x2de   : > { %v774_v33 = vpop.xlane.xlu1 %773 }
 0x2ed   : > { %v815_v36 = vpop.f32.mrf.mxu2 }
 0x2f3   : > { %v669_v20 = vpop.xlane.xlu0 %668 }
 0x2f4   : > { %1752 = vrcp.f32 %v669_v20 }
 0x2f5   : > { %1754 = vrcp.f32 %v672_v19 }
 0x2f6   : > { %1756 = vrcp.f32 %v873_v23 }
 0x2f7   : > { %1758 = vrcp.f32 %v774_v33 }
 0x2fa   : > { %v1753_v25 = vpop.eup %1752 }
 0x2fb   : > { %v675_v27 = vmul.f32 %v1753_v25, %v669_v20  ;;  %v1755_v0 = vpop.eup %1754 }
 0x2fc   : > { %v710_v30 = vpop.f32.mrf.mxu0  ;;  %v676_v32 = vmul.f32 %v1755_v0, %v672_v19  ;;  %v1757_v35 = vpop.eup %1756 }
 0x2fd   : > { %v677_v22 = vsub.f32 2.0, %v675_v27  ;;  %v879_v37 = vmul.f32 %v1757_v35, %v873_v23  ;;  %v1759_v41 = vpop.eup %1758 }
 0x2fe   : > { %v678_v15 = vsub.f32 2.0, %v676_v32  ;;  %v778_v44 = vmul.f32 %v1759_v41, %v774_v33 }
 0x2ff   : > { %v679_v34 = vmul.f32 %v1753_v25, %v677_v22  ;;  %v881_v40 = vsub.f32 2.0, %v879_v37 }
 0x300   : > { %v680_v24 = vmul.f32 %v1755_v0, %v678_v15  ;;  %v780_v48 = vsub.f32 2.0, %v778_v44 }
 0x301   : > { %v716_v10 = vmul.f32 %v710_v30, %v679_v34  ;;  %v883_v45 = vmul.f32 %v1757_v35, %v881_v40  ;;  %v1305_v40 = vld [vmem:[#allocation10 + $0x10] sm:$0xff] }
 0x302   : > { %v782_v50 = vmul.f32 %v1759_v41, %v780_v48  ;;  %v1303_v41 = vld [vmem:[#allocation10] sm:$0xff] }
 0x303   : > { %1238 = vrot.lane.b32.xlu1 %v716_v10, %s2035_s11  ;;  %v876_v38 = vpop.xlane.xlu2 %875 }
 0x304   : > { %v713_v39 = vpop.f32.mrf.mxu0  ;;  %v819_v54 = vmul.f32 %v815_v36, %v782_v50 }
 0x305   : > { %v717_v42 = vmul.f32 %v713_v39, %v680_v24  ;;  %v1306_v39 = vld [vmem:[#allocation10 + $0x18] sm:$0xff]  ;;  %v1304_v24 = vld [vmem:[#allocation10 + $0x8] sm:$0xff] }
 0x306   : > { %1325 = vmatpush.msra.mxu3 %v1306_v39 }
 0x308   : > { %1326 = vmatpush.msra.mxu3 %v1305_v40 }
 0x30a   : > { %v1016_v43 = vpop.f32.mrf.mxu2  ;;  %1327 = vmatpush.msra.mxu3 %v1304_v24 }
 0x30b   : > { %1240 = vrot.lane.b32.xlu1 %v717_v42, %s2035_s11  ;;  %v975_v26 = vpop.xlane.xlu2 %974 }
 0x30c   : > { %1760 = vrcp.f32 %v975_v26  ;;  %v914_v46 = vpop.f32.mrf.mxu0  ;;  %1328 = vmatpush.msra.mxu3 %v1303_v41 }
 0x30d   : > { %v920_v47 = vmul.f32 %v914_v46, %v883_v45  ;;  %1762 = vrcp.f32 %v876_v38 }
 0x30f   : > { %1254 = vrot.lane.b32.xlu0 %v920_v47, %s2036_s12 }
 0x312   : > { %v1761_v49 = vpop.eup %1760  ;;  %v1019_v53 = vpop.f32.mrf.mxu2 }
 0x313   : > { %v981_v51 = vmul.f32 %v1761_v49, %v975_v26  ;;  %v1179_v29 = vpop.xlane.xlu2 %1178  ;;  %v1763_v52 = vpop.eup %1762 }
 0x314   : > { %1764 = vrcp.f32 %v1179_v29  ;;  %v880_v28 = vmul.f32 %v1763_v52, %v876_v38  ;;  %v917_v2 = vpop.f32.mrf.mxu0 }
 0x315   : > { %v983_v55 = vsub.f32 2.0, %v981_v51 }
 0x316   : > { %v882_v59 = vsub.f32 2.0, %v880_v28 }
 0x317   : > { %v985_v56 = vmul.f32 %v1761_v49, %v983_v55  ;;  %1248 = vrot.lane.b32.xlu0 %v819_v54, %s2034_s9 }
 0x318   : > { %v884_v4 = vmul.f32 %v1763_v52, %v882_v59 }
 0x319   : > { %v1022_v57 = vmul.f32 %v1016_v43, %v985_v56 }
 0x31a   : > { %v1765_v58 = vpop.eup %1764  ;;  %v1220_v3 = vpop.f32.mrf.mxu2  ;;  %v921_v6 = vmul.f32 %v917_v2, %v884_v4 }
 0x31b   : > { %v1185_v60 = vmul.f32 %v1765_v58, %v1179_v29  ;;  %v1182_v61 = vpop.xlane.xlu2 %1181  ;;  %1262 = vrot.lane.b32.xlu2 %v1022_v57, %s2037_s16 }
 0x31c   : > { %1766 = vrcp.f32 %v1182_v61  ;;  %v1080_v62 = vpop.xlane.xlu0 %1079  ;;  %v1077_v63 = vpop.xlane.xlu1 %1076 }
 0x31d   : > { %v1187_v1 = vsub.f32 2.0, %v1185_v60  ;;  %1768 = vrcp.f32 %v1080_v62 }
 0x31e   : > { %1770 = vrcp.f32 %v1077_v63 }
 0x31f   : > { %v1189_v5 = vmul.f32 %v1765_v58, %v1187_v1 }
 0x321   : > { %v1226_v7 = vmul.f32 %v1220_v3, %v1189_v5 }
 0x322   : > { %v1767_v8 = vpop.eup %1766  ;;  %v1223_v0 = vpop.f32.mrf.mxu2 }
 0x323   : > { %v1769_v11 = vpop.eup %1768  ;;  %v1186_v12 = vmul.f32 %v1767_v8, %v1182_v61  ;;  %1256 = vrot.lane.b32.xlu2 %v921_v6, %s2036_s12  ;;  %1278 = vrot.lane.b32.xlu0 %v1226_v7, %s2038_s25  ;;  %v1231_v42 = vpop.permute.xlu2 %1230  ;;  %s1948_s12 = scalar_lea.hbm %s2494_s5, 32 }
 0x324   : > { %v1771_v9 = vpop.eup %1770  ;;  %v1084_v13 = vmul.f32 %v1769_v11, %v1080_v62  ;;  %v978_v14 = vpop.xlane.xlu1 %977  ;;  %p1950_p12 = scmp.lt.s32.totalorder %s1948_s12, %s1944_s21 }
 0x325   : > { %v1188_v16 = vsub.f32 2.0, %v1186_v12  ;;  %v1083_v19 = vmul.f32 %v1771_v9, %v1077_v63  ;;  %1772 = vrcp.f32 %v978_v14  ;;  %v1118_v20 = vpop.f32.mrf.mxu0 }
 0x326   : > { %v1086_v27 = vsub.f32 2.0, %v1084_v13  ;;  %1774 = vrcp.f32 %v2404_v31  ;;  %p1951_p13 = por %p1950_p12, %p1949_p11 }
 0x327   : > { %v1085_v23 = vsub.f32 2.0, %v1083_v19  ;;  %v1190_v25 = vmul.f32 %v1767_v8, %v1188_v16  ;;  %1776 = vrcp.f32 %v2413_v18 }
 0x328   : > { %v1088_v35 = vmul.f32 %v1769_v11, %v1086_v27  ;;  %p1952_p0 = pnand %p1951_p13, %p1947_p7 }
 0x329   : > { %v1227_v30 = vmul.f32 %v1223_v0, %v1190_v25  ;;  %v1087_v22 = vmul.f32 %v1771_v9, %v1085_v23 }
 0x32b   : > { %v1773_v32 = vpop.eup %1772  ;;  %v1124_v33 = vmul.f32 %v1118_v20, %v1087_v22  ;;  %1280 = vrot.lane.b32.xlu2 %v1227_v30, %s2038_s25  ;;  %v1233_v46 = vpop.permute.xlu2 %1232 }
 0x32c   : > { %v982_v34 = vmul.f32 %v1773_v32, %v978_v14  ;;  %v1775_v43 = vpop.eup %1774 }
 0x32d   : > { %1270 = vrot.lane.b32.xlu1 %v1124_v33, %s2039_s6  ;;  %v1121_v10 = vpop.f32.mrf.mxu0  ;;  %v475_v26 = vmul.f32 %v1775_v43, %v2404_v31  ;;  %v1777_v49 = vpop.eup %1776 }
 0x32e   : > { %v984_v36 = vsub.f32 2.0, %v982_v34  ;;  %v1125_v15 = vmul.f32 %v1121_v10, %v1088_v35  ;;  %v476_v51 = vmul.f32 %v1777_v49, %v2413_v18 }
 0x32f   : > { %v477_v45 = vsub.f32 2.0, %v475_v26 }
 0x330   : > { %v986_v37 = vmul.f32 %v1773_v32, %v984_v36  ;;  %1272 = vrot.lane.b32.xlu0 %v1125_v15, %s2039_s6  ;;  %v478_v55 = vsub.f32 2.0, %v476_v51 }
 0x331   : > { %v479_v50 = vmul.f32 %v1775_v43, %v477_v45 }
 0x332   : > { %v1023_v38 = vmul.f32 %v1019_v53, %v986_v37  ;;  %v480_v57 = vmul.f32 %v1777_v49, %v478_v55 }
 0x333   : > { %v510_v29 = vmul.f32 %v2411_v17, %v479_v50 }
 0x334   : > { %v511_v60 = vmul.f32 %v2415_v21, %v480_v57 }
 0x335   : > { %1264 = vrot.lane.b32.xlu1 %v1023_v38, %s2037_s16  ;;  %v1284_v53 = vsel %vm418_vm1, %v510_v29, %v1231_v42 }
 0x336   : > { %v1285_v1 = vsel %vm418_vm1, %v511_v60, %v1233_v46 }
 0x347   : > { %v1247_v44 = vpop.permute.xlu0 %1246 }
 0x375   : > { %v1239_v47 = vpop.permute.xlu1 %1238  ;;  %v1263_v52 = vpop.permute.xlu2 %1262 }
 0x376   : > { %v1287_v31 = vsel %vm1286_vm3, %v1284_v53, %v1239_v47 }
 0x377   : > { %v1290_v56 = vsel %vm1289_vm4, %v1287_v31, %v1247_v44 }
 0x37d   : > { %v1241_v54 = vpop.permute.xlu1 %1240  ;;  %v1257_v18 = vpop.permute.xlu2 %1256 }
 0x37e   : > { %v1288_v2 = vsel %vm1286_vm3, %v1285_v1, %v1241_v54 }
 0x381   : > { %v1255_v48 = vpop.permute.xlu0 %1254 }
 0x382   : > { %v1292_v58 = vsel %vm454_vm2, %v1290_v56, %v1255_v48 }
 0x383   : > { %v1295_v59 = vsel %vm1294_vm5, %v1292_v58, %v1263_v52 }
 0x385   : > { %v1281_v7 = vpop.permute.xlu2 %1280 }
 0x389   : > { %v1249_v28 = vpop.permute.xlu0 %1248 }
 0x38a   : > { %v1291_v3 = vsel %vm1289_vm4, %v1288_v2, %v1249_v28 }
 0x38b   : > { %v1293_v5 = vsel %vm454_vm2, %v1291_v3, %v1257_v18 }
 0x395   : > { %v1279_v61 = vpop.permute.xlu0 %1278 }
 0x39f   : > { %v1271_v17 = vpop.permute.xlu1 %1270 }
 0x3a0   : > { %v1298_v62 = vsel %vm1297_vm6, %v1295_v59, %v1271_v17 }
 0x3a1   : > { %v1301_v63 = vsel %vm1300_vm7, %v1298_v62, %v1279_v61 }
 0x3a2   : > { %1550 = vmatmul.msk.f32.vlgmr.msra.gmra.mxu3 %vm332_vm0, %v1301_v63  ;;  %v1273_v6 = vpop.permute.xlu0 %1272 }
 0x3a7   : > { %v1265_v4 = vpop.permute.xlu1 %1264 }
 0x3a8   : > { %v1296_v21 = vsel %vm1294_vm5, %v1293_v5, %v1265_v4 }
 0x3a9   : > { %v1299_v8 = vsel %vm1297_vm6, %v1296_v21, %v1273_v6 }
 0x3aa   : > { %v1302_v11 = vsel %vm1300_vm7, %v1299_v8, %v1281_v7 }
 0x3ab   : > { %1551 = vmatmul.msk.f32.gmra.mxu3 %vm332_vm0, %v1302_v11 }
 0x425   : > { %v1330_v12 = vpop.f32.mrf.mxu3 }
 0x426   : > { %1336 = vst.msk [vmem:[%s324_s1] sm:$0xff] %vm332_vm0, %v1330_v12 }
 0x42e   : > { %v1333_v9 = vpop.f32.mrf.mxu3 }
 0x42f   : > { %1337 = vst.msk [vmem:[%s324_s1 + $0x8] sm:$0xff] %vm332_vm0, %v1333_v9 }
 0x430   : > { %1955 = shalt.err (!%p1952_p0)
}
 0x431   : > { %s2040_s17 = smov 128  }
 0x432   : > { %1577 = dma.vmem_to_hbm [thread:$0]  (%p2177_p2), %s1354_s7, 256, %s1356_s14, %s1339_s15, %s2040_s17, %s2040_s17, %s2035_s11  }
 0x433 PF: > { %s1370_s6 = sand.u32 1, %s1998_s18   ;;  %p1597_p4 = pnand %p1485_p10, %p2118_p5 }
 0x434   : > { %s1371_s24 = scalar_lea.sflag [#allocation4], %s1370_s6 }
 0x435   : > { %p1598_p6 = pneg %p1597_p4 }
 0x437   : > { %1993 = dma.done.wait (%p1598_p6), %s1371_s24, 256  }
 0x438   : > { %1995 = vsyncadd (%p1598_p6), %s1371_s24, 4294967040  ;;  %s23_s23 = sadd.s32 1, %s2018_s23   ;;  %s2509_s18 = smov %s2002_s19 }
 0x439   : > { %p20_p8 = scmp.ge.s32.totalorder %s23_s23, 4   ;;  %s2510_s19 = smov %s2006_s20 }
 0x43a   : > { %s2511_s20 = smov %s2187_s8  ;;  %s2512_s21 = smov %s2014_s22 }
 0x43b   : > { %s2513_s22 = smov %s2515_s13  ;;  %22 = sbr.rel (!%p20_p8) target bundleno = 11 (0xb), region = 101 }
 0x440   :  { %1377 = vsyncpa [#allocation3], 1 }
 0x441   :  { %1379 = vsyncpa [#allocation3 + $0x1], 1 }
 0x442   :  { %1380 = vsyncpa [#allocation6], 1 }
 0x443   :  { %1381 = vsyncpa [#allocation9], 1 }
 0x444   :  { %1382 = vsyncpa [#allocation4], 1 }
 0x445   :  { %1384 = vsyncpa [#allocation4 + $0x1], 1 }

</bundles_post_ra>
